<compile_context>
chip_gen: v5e
topology: v5e:2x2
jax: 0.10.0
libtpu: 0.0.40
codegen_flags: <defaults>
</compile_context>

<pallas_src>
import functools

import jax
import jax.numpy as jnp
from jax import lax
from jax.experimental import pallas as pl
from jax.experimental.pallas import tpu as pltpu


def _conv_stats_kernel(x_ref, w_ref, b_ref, y_ref, stats_ref, *, K, H, W, Cin):
    """One image per grid step: conv via in-VMEM im2col + one MXU matmul, plus BN partials."""
    HW = H * W
    # In-VMEM im2col: 9 tap slices (H, W, Cin) -> (H*W, Cin), concatenated along lanes.
    # Column order is (kh, kw, c), matching the weight reshape in the wrapper.
    cols = []
    for kh in range(K):
        for kw in range(K):
            cols.append(x_ref[0, kh:kh + H, kw:kw + W, :].reshape(HW, Cin))
    patches = jnp.concatenate(cols, axis=1)                       # (HW, K*K*Cin)

    # (Cout, KKC) . (HW, KKC) contracting the last dim of both -> (Cout, HW):
    # Cout on sublanes, H*W on lanes (lane-dense, already NCHW-ordered).
    y = lax.dot_general(w_ref[...], patches, (((1,), (1,)), ((), ())),
                        preferred_element_type=jnp.float32)
    y = y + b_ref[...]                                            # (Cout, 1) bias broadcast
    y_ref[0] = y

    # Per-image BN partials: sum and per-image-centered sum of squares (numerically
    # safer than raw E[y^2]); combined exactly across images in the XLA glue.
    s = jnp.sum(y, axis=1, keepdims=True)                         # (Cout, 1)
    mu = s * (1.0 / HW)
    d = y - mu
    ss = jnp.sum(d * d, axis=1, keepdims=True)                    # (Cout, 1)
    stats_ref[0] = jnp.concatenate([s, ss], axis=1)               # (Cout, 2)


def _bn_act_kernel(y_ref, scale_ref, shift_ref, o_ref, *, activation):
    out = y_ref[...] * scale_ref[...] + shift_ref[...]            # (Cout,1) broadcasts over lanes
    if activation == 'relu':
        out = jnp.maximum(out, 0.0)
    o_ref[...] = out


@functools.partial(jax.jit, static_argnames=("activation",))
def conv_batch(x_nchw, weight_oihw, bias, gamma, beta, activation='relu', eps=1e-5):
    """Forward pass of ConvBatch.  x_nchw: (N, Cin, H, W) -> (N, Cout, H, W)."""
    N, Cin, H, W = x_nchw.shape
    Cout, Cin_w, K, K2 = weight_oihw.shape
    assert Cin == Cin_w and K == K2 and K % 2 == 1, "odd k_size, padding='same'"
    pad = K // 2
    Hp, Wp = H + 2 * pad, W + 2 * pad
    HW = H * W
    KKC = K * K * Cin

    # Minimal XLA-side prep: NCHW->NHWC + spatial 'same' zero-pad.
    # No channel padding, no halo-blocked stack copy, no im2col materialized in HBM.
    x_nhwc = jnp.transpose(x_nchw, (0, 2, 3, 1)).astype(jnp.float32)
    x_pad = jnp.pad(x_nhwc, ((0, 0), (pad, pad), (pad, pad), (0, 0)))

    # Weight (O,I,Kh,Kw) -> (O, Kh*Kw*I) to match the in-kernel im2col column order.
    w2 = jnp.transpose(weight_oihw.astype(jnp.float32), (0, 2, 3, 1)).reshape(Cout, KKC)
    b2 = bias.astype(jnp.float32).reshape(Cout, 1)

    conv_kernel = functools.partial(_conv_stats_kernel, K=K, H=H, W=W, Cin=Cin)
    y_conv, stats = pl.pallas_call(
        conv_kernel,
        out_shape=(jax.ShapeDtypeStruct((N, Cout, HW), jnp.float32),
                   jax.ShapeDtypeStruct((N, Cout, 2), jnp.float32)),
        grid_spec=pltpu.PrefetchScalarGridSpec(
            num_scalar_prefetch=0,
            grid=(N,),
            in_specs=[
                pl.BlockSpec((1, Hp, Wp, Cin), lambda n: (n, 0, 0, 0)),
                pl.BlockSpec((Cout, KKC), lambda n: (0, 0)),
                pl.BlockSpec((Cout, 1), lambda n: (0, 0)),
            ],
            out_specs=[
                pl.BlockSpec((1, Cout, HW), lambda n: (n, 0, 0)),
                pl.BlockSpec((1, Cout, 2), lambda n: (n, 0, 0)),
            ],
        ),
        compiler_params=pltpu.CompilerParams(
            # per-image outputs AND per-image stats -> no revisited blocks -> megacore-able
            dimension_semantics=("parallel",),
            vmem_limit_bytes=32 * 1024 * 1024),
    )(x_pad, w2, b2)

    # ---- BN glue: tiny (Cout,)-sized exact two-level combination of per-image stats ----
    cnt = float(H * W)
    total = float(N * H * W)
    s_n, ss_n = stats[:, :, 0], stats[:, :, 1]                    # (N, Cout) each
    mean = jnp.sum(s_n, axis=0) / total
    mean_n = s_n / cnt
    var = (jnp.sum(ss_n, axis=0)
           + jnp.sum(cnt * (mean_n - mean[None, :]) ** 2, axis=0)) / total
    scale = gamma.astype(jnp.float32) * lax.rsqrt(var + eps)
    shift = beta.astype(jnp.float32) - mean * scale
    # TODO(synk): BatchNorm2d running_mean/running_var momentum buffer updates (training-time
    # module state) are not modeled; only the forward output is computed.

    bn_kernel = functools.partial(_bn_act_kernel, activation=activation)
    y_out = pl.pallas_call(
        bn_kernel,
        out_shape=jax.ShapeDtypeStruct((N, Cout, HW), jnp.float32),
        grid_spec=pltpu.PrefetchScalarGridSpec(
            num_scalar_prefetch=0,
            grid=(1,),
            in_specs=[
                pl.BlockSpec((N, Cout, HW), lambda i: (0, 0, 0)),
                pl.BlockSpec((Cout, 1), lambda i: (0, 0)),
                pl.BlockSpec((Cout, 1), lambda i: (0, 0)),
            ],
            out_specs=pl.BlockSpec((N, Cout, HW), lambda i: (0, 0, 0)),
        ),
        input_output_aliases={0: 0},   # normalize in place: no extra HBM alloc / round-trip
        compiler_params=pltpu.CompilerParams(
            dimension_semantics=("arbitrary",),
            vmem_limit_bytes=32 * 1024 * 1024),
    )(y_conv, scale.reshape(Cout, 1), shift.reshape(Cout, 1))

    # (N, Cout, H*W) is already NCHW-ordered: the reshape is free (no transpose, no slice).
    return y_out.reshape(N, Cout, H, W)


def _reference(x_nchw, weight_oihw, bias, gamma, beta, activation='relu', eps=1e-5):
    y = jax.lax.conv_general_dilated(
        x_nchw.astype(jnp.float32), weight_oihw.astype(jnp.float32),
        window_strides=(1, 1), padding='SAME',
        dimension_numbers=('NCHW', 'OIHW', 'NCHW'))
    y = y + bias.reshape(1, -1, 1, 1)
    mean = jnp.mean(y, axis=(0, 2, 3), keepdims=True)
    var = jnp.mean((y - mean) ** 2, axis=(0, 2, 3), keepdims=True)
    y = (y - mean) * jax.lax.rsqrt(var + eps) * gamma.reshape(1, -1, 1, 1) \
        + beta.reshape(1, -1, 1, 1)
    if activation == 'relu':
        y = jnp.maximum(y, 0.0)
    return y


if __name__ == "__main__":
    # ConvBatch(in_channels=4, out_channels=8, k_size=3, activation='relu')
    N, Cin, H, W = 2, 4, 16, 16
    Cout, K = 8, 3

    key = jax.random.PRNGKey(0)
    kx, kw, kb, kg, kbt = jax.random.split(key, 5)
    x = jax.random.normal(kx, (N, Cin, H, W), jnp.float32)
    weight = jax.random.normal(kw, (Cout, Cin, K, K), jnp.float32) * 0.1
    bias = jax.random.normal(kb, (Cout,), jnp.float32) * 0.1
    gamma = 1.0 + 0.1 * jax.random.normal(kg, (Cout,), jnp.float32)
    beta = 0.1 * jax.random.normal(kbt, (Cout,), jnp.float32)

    out = conv_batch(x, weight, bias, gamma, beta, activation='relu')
    out = jax.block_until_ready(out)

    ref = _reference(x, weight, bias, gamma, beta, activation='relu')
    assert out.shape == (N, Cout, H, W)
    err = float(jnp.max(jnp.abs(out - ref)))
    assert err < 1e-4, f"mismatch vs reference: {err}"

    print("KERNEL_OK")
</pallas_src>

<mosaic_0001>
module attributes {stable_mosaic.version = 11 : i64} {
  func.func @_conv_stats_kernel(%arg0: i32, %arg1: memref<1x18x18x4xf32, #tpu.memory_space<vmem>>, %arg2: memref<8x36xf32, #tpu.memory_space<vmem>>, %arg3: memref<8x1xf32, #tpu.memory_space<vmem>>, %arg4: memref<1x8x256xf32, #tpu.memory_space<vmem>>, %arg5: memref<1x8x2xf32, #tpu.memory_space<vmem>>) attributes {dimension_semantics = [#tpu.dimension_semantics<parallel>], iteration_bounds = array<i64: 2>, scalar_prefetch = 0 : i64, scratch_operands = 0 : i64, tpu.core_type = #tpu.core_type<tc>, window_params = [{transform_indices = @transform_0, window_bounds = array<i64: 1, 18, 18, 4>}, {pipeline_mode = #tpu.pipeline_mode<synchronous>, transform_indices = @transform_1, window_bounds = array<i64: 8, 36>}, {pipeline_mode = #tpu.pipeline_mode<synchronous>, transform_indices = @transform_2, window_bounds = array<i64: 8, 1>}, {transform_indices = @transform_3, window_bounds = array<i64: 1, 8, 256>}, {transform_indices = @transform_4, window_bounds = array<i64: 1, 8, 2>}]} {
    %c0 = arith.constant 0 : index
    %c0_0 = arith.constant 0 : index
    %c0_1 = arith.constant 0 : index
    %c0_2 = arith.constant 0 : index
    %0 = vector.load %arg1[%c0, %c0_0, %c0_1, %c0_2] : memref<1x18x18x4xf32, #tpu.memory_space<vmem>>, vector<1x16x16x4xf32>
    %1 = vector.shape_cast %0 : vector<1x16x16x4xf32> to vector<16x16x4xf32>
    %2 = vector.shape_cast %1 : vector<16x16x4xf32> to vector<256x4xf32>
    %c0_3 = arith.constant 0 : index
    %c0_4 = arith.constant 0 : index
    %c1 = arith.constant 1 : index
    %c0_5 = arith.constant 0 : index
    %3 = vector.load %arg1[%c0_3, %c0_4, %c1, %c0_5] : memref<1x18x18x4xf32, #tpu.memory_space<vmem>>, vector<1x16x16x4xf32>
    %4 = vector.shape_cast %3 : vector<1x16x16x4xf32> to vector<16x16x4xf32>
    %5 = vector.shape_cast %4 : vector<16x16x4xf32> to vector<256x4xf32>
    %c0_6 = arith.constant 0 : index
    %c0_7 = arith.constant 0 : index
    %c2 = arith.constant 2 : index
    %c0_8 = arith.constant 0 : index
    %6 = vector.load %arg1[%c0_6, %c0_7, %c2, %c0_8] : memref<1x18x18x4xf32, #tpu.memory_space<vmem>>, vector<1x16x16x4xf32>
    %7 = vector.shape_cast %6 : vector<1x16x16x4xf32> to vector<16x16x4xf32>
    %8 = vector.shape_cast %7 : vector<16x16x4xf32> to vector<256x4xf32>
    %c0_9 = arith.constant 0 : index
    %c1_10 = arith.constant 1 : index
    %c0_11 = arith.constant 0 : index
    %c0_12 = arith.constant 0 : index
    %9 = vector.load %arg1[%c0_9, %c1_10, %c0_11, %c0_12] : memref<1x18x18x4xf32, #tpu.memory_space<vmem>>, vector<1x16x16x4xf32>
    %10 = vector.shape_cast %9 : vector<1x16x16x4xf32> to vector<16x16x4xf32>
    %11 = vector.shape_cast %10 : vector<16x16x4xf32> to vector<256x4xf32>
    %c0_13 = arith.constant 0 : index
    %c1_14 = arith.constant 1 : index
    %c1_15 = arith.constant 1 : index
    %c0_16 = arith.constant 0 : index
    %12 = vector.load %arg1[%c0_13, %c1_14, %c1_15, %c0_16] : memref<1x18x18x4xf32, #tpu.memory_space<vmem>>, vector<1x16x16x4xf32>
    %13 = vector.shape_cast %12 : vector<1x16x16x4xf32> to vector<16x16x4xf32>
    %14 = vector.shape_cast %13 : vector<16x16x4xf32> to vector<256x4xf32>
    %c0_17 = arith.constant 0 : index
    %c1_18 = arith.constant 1 : index
    %c2_19 = arith.constant 2 : index
    %c0_20 = arith.constant 0 : index
    %15 = vector.load %arg1[%c0_17, %c1_18, %c2_19, %c0_20] : memref<1x18x18x4xf32, #tpu.memory_space<vmem>>, vector<1x16x16x4xf32>
    %16 = vector.shape_cast %15 : vector<1x16x16x4xf32> to vector<16x16x4xf32>
    %17 = vector.shape_cast %16 : vector<16x16x4xf32> to vector<256x4xf32>
    %c0_21 = arith.constant 0 : index
    %c2_22 = arith.constant 2 : index
    %c0_23 = arith.constant 0 : index
    %c0_24 = arith.constant 0 : index
    %18 = vector.load %arg1[%c0_21, %c2_22, %c0_23, %c0_24] : memref<1x18x18x4xf32, #tpu.memory_space<vmem>>, vector<1x16x16x4xf32>
    %19 = vector.shape_cast %18 : vector<1x16x16x4xf32> to vector<16x16x4xf32>
    %20 = vector.shape_cast %19 : vector<16x16x4xf32> to vector<256x4xf32>
    %c0_25 = arith.constant 0 : index
    %c2_26 = arith.constant 2 : index
    %c1_27 = arith.constant 1 : index
    %c0_28 = arith.constant 0 : index
    %21 = vector.load %arg1[%c0_25, %c2_26, %c1_27, %c0_28] : memref<1x18x18x4xf32, #tpu.memory_space<vmem>>, vector<1x16x16x4xf32>
    %22 = vector.shape_cast %21 : vector<1x16x16x4xf32> to vector<16x16x4xf32>
    %23 = vector.shape_cast %22 : vector<16x16x4xf32> to vector<256x4xf32>
    %c0_29 = arith.constant 0 : index
    %c2_30 = arith.constant 2 : index
    %c2_31 = arith.constant 2 : index
    %c0_32 = arith.constant 0 : index
    %24 = vector.load %arg1[%c0_29, %c2_30, %c2_31, %c0_32] : memref<1x18x18x4xf32, #tpu.memory_space<vmem>>, vector<1x16x16x4xf32>
    %25 = vector.shape_cast %24 : vector<1x16x16x4xf32> to vector<16x16x4xf32>
    %26 = vector.shape_cast %25 : vector<16x16x4xf32> to vector<256x4xf32>
    %27 = tpu.concatenate %2, %5, %8, %11, %14, %17, %20, %23, %26 in 1 : vector<256x4xf32>, vector<256x4xf32>, vector<256x4xf32>, vector<256x4xf32>, vector<256x4xf32>, vector<256x4xf32>, vector<256x4xf32>, vector<256x4xf32>, vector<256x4xf32> -> vector<256x36xf32>
    %c0_33 = arith.constant 0 : index
    %c0_34 = arith.constant 0 : index
    %28 = vector.load %arg2[%c0_33, %c0_34] : memref<8x36xf32, #tpu.memory_space<vmem>>, vector<8x36xf32>
    %cst = arith.constant dense<0.000000e+00> : vector<8x256xf32>
    %29 = tpu.matmul %28, %27, %cst {dimension_numbers = #tpu.dot_dimension_numbers<[1], [1], [0], [0], [0, 0, 1, 0], [], []>} : vector<8x36xf32>, vector<256x36xf32>, vector<8x256xf32> -> vector<8x256xf32>
    %c0_35 = arith.constant 0 : index
    %c0_36 = arith.constant 0 : index
    %30 = vector.load %arg3[%c0_35, %c0_36] : memref<8x1xf32, #tpu.memory_space<vmem>>, vector<8x1xf32>
    %31 = vector.broadcast %30 : vector<8x1xf32> to vector<8x256xf32>
    %32 = arith.addf %29, %31 : vector<8x256xf32>
    %c0_37 = arith.constant 0 : index
    %c0_38 = arith.constant 0 : index
    %c0_39 = arith.constant 0 : index
    %33 = vector.load %arg4[%c0_37, %c0_38, %c0_39] : memref<1x8x256xf32, #tpu.memory_space<vmem>>, vector<1x8x256xf32>
    %34 = vector.shape_cast %33 : vector<1x8x256xf32> to vector<8x256xf32>
    %35 = vector.shape_cast %32 : vector<8x256xf32> to vector<1x8x256xf32>
    tpu.vector_store %arg4[%c0_37, %c0_38, %c0_39], %35 {strides = array<i32>} : memref<1x8x256xf32, #tpu.memory_space<vmem>>, vector<1x8x256xf32>,
    %cst_40 = arith.constant dense<0.000000e+00> : vector<8xf32>
    %36 = vector.multi_reduction <add>, %32, %cst_40 [1] : vector<8x256xf32> to vector<8xf32>
    %37 = vector.shape_cast %36 : vector<8xf32> to vector<8x1xf32>
    %cst_41 = arith.constant 3.906250e-03 : f32
    %38 = vector.broadcast %cst_41 : f32 to vector<8x1xf32>
    %39 = arith.mulf %37, %38 : vector<8x1xf32>
    %40 = vector.broadcast %39 : vector<8x1xf32> to vector<8x256xf32>
    %41 = arith.subf %32, %40 : vector<8x256xf32>
    %42 = arith.mulf %41, %41 : vector<8x256xf32>
    %cst_42 = arith.constant dense<0.000000e+00> : vector<8xf32>
    %43 = vector.multi_reduction <add>, %42, %cst_42 [1] : vector<8x256xf32> to vector<8xf32>
    %44 = vector.shape_cast %43 : vector<8xf32> to vector<8x1xf32>
    %45 = tpu.concatenate %37, %44 in 1 : vector<8x1xf32>, vector<8x1xf32> -> vector<8x2xf32>
    %c0_43 = arith.constant 0 : index
    %c0_44 = arith.constant 0 : index
    %c0_45 = arith.constant 0 : index
    %46 = vector.load %arg5[%c0_43, %c0_44, %c0_45] : memref<1x8x2xf32, #tpu.memory_space<vmem>>, vector<1x8x2xf32>
    %47 = vector.shape_cast %46 : vector<1x8x2xf32> to vector<8x2xf32>
    %48 = vector.shape_cast %45 : vector<8x2xf32> to vector<1x8x2xf32>
    tpu.vector_store %arg5[%c0_43, %c0_44, %c0_45], %48 {strides = array<i32>} : memref<1x8x2xf32, #tpu.memory_space<vmem>>, vector<1x8x2xf32>,
    return
  }
  func.func @transform_0(%arg0: i32) -> (i32, i32, i32, i32) {
    %c0_i32 = arith.constant 0 : i32
    %c0_i32_0 = arith.constant 0 : i32
    %c0_i32_1 = arith.constant 0 : i32
    %c0_i32_2 = arith.constant 0 : i32
    return %arg0, %c0_i32, %c0_i32_0, %c0_i32_1 : i32, i32, i32, i32
  }
  func.func @transform_1(%arg0: i32) -> (i32, i32) {
    %c0_i32 = arith.constant 0 : i32
    %c0_i32_0 = arith.constant 0 : i32
    %c0_i32_1 = arith.constant 0 : i32
    return %c0_i32, %c0_i32_0 : i32, i32
  }
  func.func @transform_2(%arg0: i32) -> (i32, i32) {
    %c0_i32 = arith.constant 0 : i32
    %c0_i32_0 = arith.constant 0 : i32
    %c0_i32_1 = arith.constant 0 : i32
    return %c0_i32, %c0_i32_0 : i32, i32
  }
  func.func @transform_3(%arg0: i32) -> (i32, i32, i32) {
    %c0_i32 = arith.constant 0 : i32
    %c0_i32_0 = arith.constant 0 : i32
    %c0_i32_1 = arith.constant 0 : i32
    return %arg0, %c0_i32, %c0_i32_0 : i32, i32, i32
  }
  func.func @transform_4(%arg0: i32) -> (i32, i32, i32) {
    %c0_i32 = arith.constant 0 : i32
    %c0_i32_0 = arith.constant 0 : i32
    %c0_i32_1 = arith.constant 0 : i32
    return %arg0, %c0_i32, %c0_i32_0 : i32, i32, i32
  }
}

module attributes {stable_mosaic.version = 11 : i64} {
  func.func @_bn_act_kernel(%arg0: i32, %arg1: memref<2x8x256xf32, #tpu.memory_space<vmem>>, %arg2: memref<8x1xf32, #tpu.memory_space<vmem>>, %arg3: memref<8x1xf32, #tpu.memory_space<vmem>>, %arg4: memref<2x8x256xf32, #tpu.memory_space<vmem>>) attributes {dimension_semantics = [#tpu.dimension_semantics<arbitrary>], iteration_bounds = array<i64: 1>, scalar_prefetch = 0 : i64, scratch_operands = 0 : i64, tpu.core_type = #tpu.core_type<tc>, window_params = [{pipeline_mode = #tpu.pipeline_mode<synchronous>, transform_indices = @transform_0, window_bounds = array<i64: 2, 8, 256>}, {pipeline_mode = #tpu.pipeline_mode<synchronous>, transform_indices = @transform_1, window_bounds = array<i64: 8, 1>}, {pipeline_mode = #tpu.pipeline_mode<synchronous>, transform_indices = @transform_2, window_bounds = array<i64: 8, 1>}, {pipeline_mode = #tpu.pipeline_mode<synchronous>, transform_indices = @transform_3, window_bounds = array<i64: 2, 8, 256>}]} {
    %c0 = arith.constant 0 : index
    %c0_0 = arith.constant 0 : index
    %c0_1 = arith.constant 0 : index
    %0 = vector.load %arg1[%c0, %c0_0, %c0_1] : memref<2x8x256xf32, #tpu.memory_space<vmem>>, vector<2x8x256xf32>
    %c0_2 = arith.constant 0 : index
    %c0_3 = arith.constant 0 : index
    %1 = vector.load %arg2[%c0_2, %c0_3] : memref<8x1xf32, #tpu.memory_space<vmem>>, vector<8x1xf32>
    %2 = vector.shape_cast %1 : vector<8x1xf32> to vector<1x8x1xf32>
    %3 = vector.broadcast %2 : vector<1x8x1xf32> to vector<2x8x256xf32>
    %4 = arith.mulf %0, %3 : vector<2x8x256xf32>
    %c0_4 = arith.constant 0 : index
    %c0_5 = arith.constant 0 : index
    %5 = vector.load %arg3[%c0_4, %c0_5] : memref<8x1xf32, #tpu.memory_space<vmem>>, vector<8x1xf32>
    %6 = vector.shape_cast %5 : vector<8x1xf32> to vector<1x8x1xf32>
    %7 = vector.broadcast %6 : vector<1x8x1xf32> to vector<2x8x256xf32>
    %8 = arith.addf %4, %7 : vector<2x8x256xf32>
    %cst = arith.constant 0.000000e+00 : f32
    %9 = vector.broadcast %cst : f32 to vector<2x8x256xf32>
    %10 = arith.maximumf %8, %9 : vector<2x8x256xf32>
    %c0_6 = arith.constant 0 : index
    %c0_7 = arith.constant 0 : index
    %c0_8 = arith.constant 0 : index
    %11 = vector.load %arg4[%c0_6, %c0_7, %c0_8] : memref<2x8x256xf32, #tpu.memory_space<vmem>>, vector<2x8x256xf32>
    tpu.vector_store %arg4[%c0_6, %c0_7, %c0_8], %10 {strides = array<i32>} : memref<2x8x256xf32, #tpu.memory_space<vmem>>, vector<2x8x256xf32>,
    return
  }
  func.func @transform_0(%arg0: i32) -> (i32, i32, i32) {
    %c0_i32 = arith.constant 0 : i32
    %c0_i32_0 = arith.constant 0 : i32
    %c0_i32_1 = arith.constant 0 : i32
    %c0_i32_2 = arith.constant 0 : i32
    return %c0_i32, %c0_i32_0, %c0_i32_1 : i32, i32, i32
  }
  func.func @transform_1(%arg0: i32) -> (i32, i32) {
    %c0_i32 = arith.constant 0 : i32
    %c0_i32_0 = arith.constant 0 : i32
    %c0_i32_1 = arith.constant 0 : i32
    return %c0_i32, %c0_i32_0 : i32, i32
  }
  func.func @transform_2(%arg0: i32) -> (i32, i32) {
    %c0_i32 = arith.constant 0 : i32
    %c0_i32_0 = arith.constant 0 : i32
    %c0_i32_1 = arith.constant 0 : i32
    return %c0_i32, %c0_i32_0 : i32, i32
  }
  func.func @transform_3(%arg0: i32) -> (i32, i32, i32) {
    %c0_i32 = arith.constant 0 : i32
    %c0_i32_0 = arith.constant 0 : i32
    %c0_i32_1 = arith.constant 0 : i32
    %c0_i32_2 = arith.constant 0 : i32
    return %c0_i32, %c0_i32_0, %c0_i32_1 : i32, i32, i32
  }
}

</mosaic_0001>

<bundles_post_ra>
// kernel: conv_batch.3
= control target key start
LH: loop header
LB: loop body
LE: loop exit
PB: predicated region body
PF: predicated region fallthrough
CT: control target
= control target key end

     0   :  { %v52_v0 = vmov 0   ;;  %s103_s1 = inlined_call_operand.vmem [shape: f32[8,1], index: 1, kind: input, shape index: {}]   ;;  %s104_s2 = inlined_call_operand.vmem [shape: f32[8,1], index: 2, kind: input, shape index: {}]   ;;  %s105_s0 = inlined_call_operand.vmem [shape: f32[2,8,256], index: 0, kind: input, shape index: {}, may-alias: {0,3}]   ;;  %s106_s3 = inlined_call_operand.vmem [shape: f32[2,8,256], index: 3, kind: output, shape index: {}, may-alias: {0,3}]  }
   0x1   :  { %51 = vset.pattern.permute.xlu0 %v52_v0  ;;  %v18_v1 = vld [vmem:[%s103_s1] sm:$0xff]  ;;  %v15_v5 = vld [vmem:[%s105_s0 + $0x8] sm:$0xff]  ;;  %v16_v6 = vld [vmem:[%s105_s0 + $0x10] sm:$0xff] }
   0x2   :  { %21 = vperm.xlu0 %51, %v18_v1   ;;  %v28_v2 = vld [vmem:[%s104_s2] sm:$0xff]  ;;  %v17_v7 = vld [vmem:[%s105_s0 + $0x18] sm:$0xff] }
   0x3   :  { %v14_v4 = vld [vmem:[%s105_s0] sm:$0xff] }
   0xa   :  { %31 = vperm.xlu0 %51, %v28_v2  }
  0x74   :  { %v22_v3 = vpop.permute.xlu0 %21 }
  0x75   :  { %v24_v8 = vmul.f32 %v22_v3, %v14_v4  ;;  %v25_v9 = vmul.f32 %v22_v3, %v15_v5  ;;  %v26_v10 = vmul.f32 %v22_v3, %v16_v6  ;;  %v27_v11 = vmul.f32 %v22_v3, %v17_v7 }
  0x7c   :  { %v32_v12 = vpop.permute.xlu0 %31 }
  0x7d   :  { %v34_v13 = vadd.f32 %v32_v12, %v24_v8  ;;  %v35_v14 = vadd.f32 %v32_v12, %v25_v9  ;;  %v36_v15 = vadd.f32 %v32_v12, %v26_v10  ;;  %v37_v16 = vadd.f32 %v32_v12, %v27_v11 }
  0x7f   :  { %v38_v17 = vmax.f32 %v34_v13, 0.0  ;;  %v39_v18 = vmax.f32 %v35_v14, 0.0  ;;  %v40_v19 = vmax.f32 %v36_v15, 0.0  ;;  %v41_v20 = vmax.f32 %v37_v16, 0.0 }
  0x81   :  { %42 = vst [vmem:[%s106_s3] sm:$0xff] %v38_v17 }
  0x82   :  { %43 = vst [vmem:[%s106_s3 + $0x8] sm:$0xff] %v39_v18 }
  0x83   :  { %44 = vst [vmem:[%s106_s3 + $0x10] sm:$0xff] %v40_v19 }
  0x84   :  { %45 = vst [vmem:[%s106_s3 + $0x18] sm:$0xff] %v41_v20 }

// kernel: conv_batch.2
= control target key start
LH: loop header
LB: loop body
LE: loop exit
PB: predicated region body
PF: predicated region fallthrough
CT: control target
= control target key end

     0   :  { %s2341_s15 = smov 0   ;;  %s3985_s0 = inlined_call_operand.vmem [shape: f32[2,18,18,4], index: 0, kind: input, shape index: {}]   ;;  %s3986_s1 = inlined_call_operand.vmem [shape: f32[8,36], index: 1, kind: input, shape index: {}]   ;;  %s3987_s2 = inlined_call_operand.vmem [shape: f32[8,1], index: 2, kind: input, shape index: {}]   ;;  %s3988_s3 = inlined_call_operand.vmem [shape: f32[2,8,256], index: 3, kind: output, shape index: {0}]   ;;  %s3989_s4 = inlined_call_operand.vmem [shape: f32[2,8,2], index: 4, kind: output, shape index: {1}]  }
   0x1 LB: > { %s2037_s16 = sadd.s32 4294967295, %s2305_s15   ;;  %p2041_p0 = scmp.ge.s32.totalorder %s2305_s15, 1  ;;  %s2305_s15 = sphi %s2341_s15, %s15_s15  }
   0x2   : > { %p165_p1 = scmp.lt.s32.totalorder %s2305_s15, 3 }
   0x4   : > { %p166_p2 = pnand %p2041_p0, %p165_p1 }
   0x6   : > { %169 = sbr.rel (%p166_p2) target bundleno = 1190 (0x4a6), region = 32 }
   0xb   : > { %p195_p3 = scmp.lt.s32.totalorder %s2037_s16, 1  ;;  %s2307_s21 = smov 4   ;;  %vm1523_vm0 = vcmask 31744   ;;  %vm1556_vm1 = vcmask 64512   ;;  %vm1589_vm2 = vcmask 97280   ;;  %vm1622_vm3 = vcmask 130048  }
   0xc   : > { %s2308_s22 = smov 8   ;;  %s2309_s23 = smov 12   ;;  %vm1655_vm4 = vcmask 162816   ;;  %vm1721_vm5 = vcmask 228352   ;;  %vm1688_vm6 = vcmask 195584   ;;  %vm1754_vm7 = vcmask 261120  }
   0xd   : > { %s4243_s16 = smov (!%p195_p3, %s2037_s16), 1  ;;  %s2310_s24 = smov 16   ;;  %vm1794_vm8 = vcmask 293888   ;;  %vm1947_vm9 = vcmask 7168   ;;  %vm1949_vm10 = vcmask 15360  }
   0xe   : > { %s2275_s17 = smul.u32 432, %s4243_s16  ;;  %s2311_s25 = smov 20  }
   0xf   : > { %s2312_s26 = smov 24   ;;  %s2313_s27 = smov 32  }
  0x10   : > { %s2355_s20 = scalar_lea.vmem %s3985_s0, %s2275_s17  ;;  %s2314_s28 = smov 28  }
  0x11   : > { %v2358_v0 = vld [vmem:[%s2355_s20 + $0x31] sm:$0xff]  ;;  %v2361_v1 = vld [vmem:[%s2355_s20 + $0x19] sm:$0xff]  ;;  %v241_v2 = vld [vmem:[%s2355_s20 + $0x1] sm:$0xff]  ;;  %s2274_s7 = sshll.u32 %s4243_s16, 4  ;;  %s2045_s11 = sshll.u32 %s4243_s16, 3 }
  0x12   : > { %539 = vrot.lane.b32.xlu2 %v2358_v0, %s2307_s21  ;;  %535 = vrot.lane.b32.xlu1 %v2361_v1, %s2307_s21  ;;  %v2370_v3 = vld [vmem:[%s2355_s20 + $0x39] sm:$0xff]  ;;  %v2373_v4 = vld [vmem:[%s2355_s20 + $0x21] sm:$0xff]  ;;  %s204_s10 = scalar_lea.vmem %s3988_s3, %s2274_s7  ;;  %s208_s14 = scalar_lea.vmem %s3989_s4, %s2045_s11 }
  0x13   : > { %531 = vrot.lane.b32.xlu0 %v241_v2, %s2307_s21  ;;  %v242_v5 = vld [vmem:[%s2355_s20 + $0x9] sm:$0xff]  ;;  %v2382_v6 = vld [vmem:[%s2355_s20 + $0x61] sm:$0xff]  ;;  %v2385_v7 = vld [vmem:[%s2355_s20 + $0x51] sm:$0xff] }
  0x14   : > { %v2388_v8 = vld [vmem:[%s2355_s20 + $0x49] sm:$0xff]  ;;  %v2397_v9 = vld [vmem:[%s2355_s20 + $0x81] sm:$0xff]  ;;  %v2400_v10 = vld [vmem:[%s2355_s20 + $0x79] sm:$0xff] }
  0x15   : > { %v2403_v11 = vld [vmem:[%s2355_s20 + $0x69] sm:$0xff]  ;;  %v2415_v13 = vld [vmem:[%s2355_s20 + $0x99] sm:$0xff]  ;;  %v2418_v14 = vld [vmem:[%s2355_s20 + $0x91] sm:$0xff] }
  0x16   : > { %v2412_v12 = vld [vmem:[%s2355_s20 + $0xa9] sm:$0xff]  ;;  %v2430_v16 = vld [vmem:[%s2355_s20 + $0xc1] sm:$0xff]  ;;  %v2433_v17 = vld [vmem:[%s2355_s20 + $0xb1] sm:$0xff] }
  0x17   : > { %v2427_v15 = vld [vmem:[%s2355_s20 + $0xc9] sm:$0xff]  ;;  %v2442_v18 = vld [vmem:[%s2355_s20 + $0xf1] sm:$0xff]  ;;  %v2445_v19 = vld [vmem:[%s2355_s20 + $0xe1] sm:$0xff] }
  0x18   : > { %v2448_v20 = vld [vmem:[%s2355_s20 + $0xd9] sm:$0xff]  ;;  %v2457_v21 = vld [vmem:[%s2355_s20 + $0x111] sm:$0xff]  ;;  %v2460_v22 = vld [vmem:[%s2355_s20 + $0x109] sm:$0xff] }
  0x19   : > { %v2463_v23 = vld [vmem:[%s2355_s20 + $0xf9] sm:$0xff]  ;;  %v2475_v25 = vld [vmem:[%s2355_s20 + $0x129] sm:$0xff]  ;;  %v2478_v26 = vld [vmem:[%s2355_s20 + $0x121] sm:$0xff] }
  0x1a   : > { %541 = vrot.lane.b32.xlu2 %v2370_v3, %s2307_s21  ;;  %537 = vrot.lane.b32.xlu1 %v2373_v4, %s2307_s21  ;;  %v2472_v24 = vld [vmem:[%s2355_s20 + $0x139] sm:$0xff]  ;;  %v2490_v28 = vld [vmem:[%s2355_s20 + $0x151] sm:$0xff] }
  0x1b   : > { %533 = vrot.lane.b32.xlu0 %v242_v5, %s2307_s21  ;;  %v2487_v27 = vld [vmem:[%s2355_s20 + $0x159] sm:$0xff]  ;;  %v2493_v29 = vld [vmem:[%s2355_s20 + $0x141] sm:$0xff]  ;;  %v2503_v31 = vld [vmem:[%s2355_s20 + $0x171] sm:$0xff] }
  0x1c   : > { %v273_v30 = vld [vmem:[%s2355_s20 + $0x2] sm:$0xff]  ;;  %v2517_v34 = vld [vmem:[%s2355_s20 + $0x1a] sm:$0xff]  ;;  %v274_v35 = vld [vmem:[%s2355_s20 + $0xa] sm:$0xff] }
  0x1d   : > { %v2506_v32 = vld [vmem:[%s2355_s20 + $0x169] sm:$0xff]  ;;  %v2531_v38 = vld [vmem:[%s2355_s20 + $0x3a] sm:$0xff]  ;;  %v2534_v39 = vld [vmem:[%s2355_s20 + $0x32] sm:$0xff] }
  0x1e   : > { %v2514_v33 = vld [vmem:[%s2355_s20 + $0x22] sm:$0xff]  ;;  %v2528_v37 = vld [vmem:[%s2355_s20 + $0x4a] sm:$0xff]  ;;  %v2551_v43 = vld [vmem:[%s2355_s20 + $0x52] sm:$0xff] }
  0x1f   : > { %v2545_v41 = vld [vmem:[%s2355_s20 + $0x6a] sm:$0xff]  ;;  %v2548_v42 = vld [vmem:[%s2355_s20 + $0x62] sm:$0xff]  ;;  %v2562_v45 = vld [vmem:[%s2355_s20 + $0x92] sm:$0xff] }
  0x20   : > { %v2565_v46 = vld [vmem:[%s2355_s20 + $0x82] sm:$0xff]  ;;  %v2568_v47 = vld [vmem:[%s2355_s20 + $0x7a] sm:$0xff]  ;;  %v2583_v51 = vld [vmem:[%s2355_s20 + $0xb2] sm:$0xff] }
  0x21   : > { %v2586_v52 = vld [vmem:[%s2355_s20 + $0xaa] sm:$0xff]  ;;  %v2589_v53 = vld [vmem:[%s2355_s20 + $0x9a] sm:$0xff]  ;;  %v2610_v59 = vld [vmem:[%s2355_s20 + $0xc2] sm:$0xff] }
  0x22   : > { %547 = vrot.lane.b32.xlu2 %v2382_v6, %s2307_s21  ;;  %545 = vrot.lane.b32.xlu1 %v2385_v7, %s2307_s21  ;;  %v2604_v57 = vld [vmem:[%s2355_s20 + $0xda] sm:$0xff]  ;;  %v2607_v58 = vld [vmem:[%s2355_s20 + $0xca] sm:$0xff] }
  0x23   : > { %543 = vrot.lane.b32.xlu0 %v2388_v8, %s2307_s21  ;;  %v2625_v63 = vld [vmem:[%s2355_s20 + $0xfa] sm:$0xff]  ;;  %v2628_v2 = vld [vmem:[%s2355_s20 + $0xf2] sm:$0xff]  ;;  %v2631_v5 = vld [vmem:[%s2355_s20 + $0xe2] sm:$0xff] }
  0x2a   : > { %553 = vrot.lane.b32.xlu2 %v2397_v9, %s2307_s21  ;;  %551 = vrot.lane.b32.xlu1 %v2400_v10, %s2307_s21 }
  0x2b   : > { %549 = vrot.lane.b32.xlu0 %v2403_v11, %s2307_s21 }
  0x32   : > { %559 = vrot.lane.b32.xlu2 %v2412_v12, %s2307_s21  ;;  %557 = vrot.lane.b32.xlu1 %v2415_v13, %s2307_s21 }
  0x33   : > { %555 = vrot.lane.b32.xlu0 %v2418_v14, %s2307_s21 }
  0x3a   : > { %565 = vrot.lane.b32.xlu2 %v2427_v15, %s2307_s21  ;;  %563 = vrot.lane.b32.xlu1 %v2430_v16, %s2307_s21 }
  0x3b   : > { %561 = vrot.lane.b32.xlu0 %v2433_v17, %s2307_s21 }
  0x42   : > { %571 = vrot.lane.b32.xlu2 %v2442_v18, %s2307_s21  ;;  %569 = vrot.lane.b32.xlu1 %v2445_v19, %s2307_s21 }
  0x43   : > { %567 = vrot.lane.b32.xlu0 %v2448_v20, %s2307_s21 }
  0x4a   : > { %577 = vrot.lane.b32.xlu2 %v2457_v21, %s2307_s21  ;;  %575 = vrot.lane.b32.xlu1 %v2460_v22, %s2307_s21 }
  0x4b   : > { %573 = vrot.lane.b32.xlu0 %v2463_v23, %s2307_s21 }
  0x52   : > { %583 = vrot.lane.b32.xlu2 %v2472_v24, %s2307_s21  ;;  %581 = vrot.lane.b32.xlu1 %v2475_v25, %s2307_s21 }
  0x53   : > { %579 = vrot.lane.b32.xlu0 %v2478_v26, %s2307_s21 }
  0x5a   : > { %589 = vrot.lane.b32.xlu2 %v2487_v27, %s2307_s21  ;;  %587 = vrot.lane.b32.xlu1 %v2490_v28, %s2307_s21 }
  0x5b   : > { %585 = vrot.lane.b32.xlu0 %v2493_v29, %s2307_s21 }
  0x62   : > { %659 = vrot.lane.b32.xlu2 %v273_v30, %s2308_s22  ;;  %593 = vrot.lane.b32.xlu1 %v2503_v31, %s2307_s21 }
  0x63   : > { %591 = vrot.lane.b32.xlu0 %v2506_v32, %s2307_s21 }
  0x6a   : > { %665 = vrot.lane.b32.xlu2 %v2514_v33, %s2308_s22  ;;  %663 = vrot.lane.b32.xlu1 %v2517_v34, %s2308_s22 }
  0x6b   : > { %661 = vrot.lane.b32.xlu0 %v274_v35, %s2308_s22 }
  0x6c   : > { %v2525_v36 = vpop.permute.xlu2 %539 }
  0x6d   : > { %4026 = vst [vmem:[#allocation2_spill] sm:$0xff] %v2525_v36  ;;  %v2649_v36 = vld [vmem:[%s2355_s20 + $0x112] sm:$0xff] }
  0x72   : > { %671 = vrot.lane.b32.xlu2 %v2528_v37, %s2308_s22  ;;  %669 = vrot.lane.b32.xlu1 %v2531_v38, %s2308_s22 }
  0x73   : > { %667 = vrot.lane.b32.xlu0 %v2534_v39, %s2308_s22 }
  0x74   : > { %v2542_v40 = vpop.permute.xlu2 %541 }
  0x75   : > { %4027 = vst [vmem:[#allocation3_spill] sm:$0xff] %v2542_v40  ;;  %v2652_v40 = vld [vmem:[%s2355_s20 + $0x10a] sm:$0xff] }
  0x7a   : > { %677 = vrot.lane.b32.xlu2 %v2545_v41, %s2308_s22  ;;  %675 = vrot.lane.b32.xlu1 %v2548_v42, %s2308_s22 }
  0x7b   : > { %673 = vrot.lane.b32.xlu0 %v2551_v43, %s2308_s22 }
  0x7c   : > { %v2559_v44 = vpop.permute.xlu2 %547 }
  0x7d   : > { %4028 = vst [vmem:[#allocation4_spill] sm:$0xff] %v2559_v44 }
  0x82   : > { %683 = vrot.lane.b32.xlu2 %v2562_v45, %s2308_s22  ;;  %681 = vrot.lane.b32.xlu1 %v2565_v46, %s2308_s22 }
  0x83   : > { %679 = vrot.lane.b32.xlu0 %v2568_v47, %s2308_s22 }
  0x84   : > { %v2576_v48 = vpop.permute.xlu2 %553  ;;  %v2578_v49 = vpop.permute.xlu1 %535 }
  0x85   : > { %4029 = vst [vmem:[#allocation5_spill] sm:$0xff] %v2576_v48  ;;  %v2580_v50 = vpop.permute.xlu0 %531 }
  0x86   : > { %4030 = vst [vmem:[#allocation6_spill] sm:$0xff] %v2578_v49  ;;  %v2691_v49 = vld [vmem:[%s2355_s20 + $0x15a] sm:$0xff] }
  0x87   : > { %4031 = vst [vmem:[#allocation7_spill] sm:$0xff] %v2580_v50 }
  0x88   : > { %4049 = vst [vmem:[#allocation25_spill] sm:$0xff] %v2691_v49 }
  0x8a   : > { %689 = vrot.lane.b32.xlu2 %v2583_v51, %s2308_s22  ;;  %687 = vrot.lane.b32.xlu1 %v2586_v52, %s2308_s22 }
  0x8b   : > { %685 = vrot.lane.b32.xlu0 %v2589_v53, %s2308_s22 }
  0x8c   : > { %v2597_v54 = vpop.permute.xlu2 %559  ;;  %v2599_v55 = vpop.permute.xlu1 %537 }
  0x8d   : > { %4032 = vst [vmem:[#allocation8_spill] sm:$0xff] %v2597_v54  ;;  %v2601_v56 = vpop.permute.xlu0 %533 }
  0x8e   : > { %4033 = vst [vmem:[#allocation9_spill] sm:$0xff] %v2599_v55  ;;  %v2712_v55 = vld [vmem:[%s2355_s20 + $0x18] sm:$0xff] }
  0x8f   : > { %4034 = vst [vmem:[#allocation10_spill] sm:$0xff] %v2601_v56  ;;  %v2646_v56 = vld [vmem:[%s2355_s20 + $0x122] sm:$0xff] }
  0x90   : > { %4055 = vst [vmem:[#allocation31_spill] sm:$0xff] %v2712_v55 }
  0x92   : > { %695 = vrot.lane.b32.xlu2 %v2604_v57, %s2308_s22  ;;  %693 = vrot.lane.b32.xlu1 %v2607_v58, %s2308_s22 }
  0x93   : > { %691 = vrot.lane.b32.xlu0 %v2610_v59, %s2308_s22 }
  0x94   : > { %v2618_v60 = vpop.permute.xlu2 %565  ;;  %v2620_v61 = vpop.permute.xlu1 %545 }
  0x95   : > { %4035 = vst [vmem:[#allocation11_spill] sm:$0xff] %v2618_v60  ;;  %v2622_v62 = vpop.permute.xlu0 %543  ;;  %v2670_v60 = vld [vmem:[%s2355_s20 + $0x13a] sm:$0xff] }
  0x96   : > { %4036 = vst [vmem:[#allocation12_spill] sm:$0xff] %v2620_v61 }
  0x97   : > { %4037 = vst [vmem:[#allocation13_spill] sm:$0xff] %v2622_v62  ;;  %v2709_v62 = vld [vmem:[%s2355_s20 + $0x172] sm:$0xff] }
  0x98   : > { %4054 = vst [vmem:[#allocation30_spill] sm:$0xff] %v2709_v62 }
  0x9a   : > { %701 = vrot.lane.b32.xlu2 %v2625_v63, %s2308_s22  ;;  %699 = vrot.lane.b32.xlu1 %v2628_v2, %s2308_s22 }
  0x9b   : > { %697 = vrot.lane.b32.xlu0 %v2631_v5, %s2308_s22 }
  0x9c   : > { %v2639_v30 = vpop.permute.xlu2 %571  ;;  %v2641_v35 = vpop.permute.xlu1 %551 }
  0x9d   : > { %4038 = vst [vmem:[#allocation14_spill] sm:$0xff] %v2639_v30  ;;  %v2643_v50 = vpop.permute.xlu0 %549  ;;  %v2667_v30 = vld [vmem:[%s2355_s20 + $0x142] sm:$0xff] }
  0x9e   : > { %4039 = vst [vmem:[#allocation15_spill] sm:$0xff] %v2641_v35  ;;  %v2673_v35 = vld [vmem:[%s2355_s20 + $0x12a] sm:$0xff] }
  0x9f   : > { %4040 = vst [vmem:[#allocation16_spill] sm:$0xff] %v2643_v50  ;;  %v2694_v50 = vld [vmem:[%s2355_s20 + $0x152] sm:$0xff] }
  0xa0   : > { %4044 = vst [vmem:[#allocation20_spill] sm:$0xff] %v2667_v30 }
  0xa1   : > { %4050 = vst [vmem:[#allocation26_spill] sm:$0xff] %v2694_v50 }
  0xa2   : > { %707 = vrot.lane.b32.xlu2 %v2646_v56, %s2308_s22  ;;  %705 = vrot.lane.b32.xlu1 %v2649_v36, %s2308_s22 }
  0xa3   : > { %703 = vrot.lane.b32.xlu0 %v2652_v40, %s2308_s22 }
  0xa4   : > { %v2660_v44 = vpop.permute.xlu2 %577  ;;  %v2662_v48 = vpop.permute.xlu1 %557 }
  0xa5   : > { %4041 = vst [vmem:[#allocation17_spill] sm:$0xff] %v2660_v44  ;;  %v2664_v54 = vpop.permute.xlu0 %555 }
  0xa6   : > { %4042 = vst [vmem:[#allocation18_spill] sm:$0xff] %v2662_v48 }
  0xa7   : > { %4043 = vst [vmem:[#allocation19_spill] sm:$0xff] %v2664_v54  ;;  %v2688_v54 = vld [vmem:[%s2355_s20 + $0x16a] sm:$0xff] }
  0xa8   : > { %4048 = vst [vmem:[#allocation24_spill] sm:$0xff] %v2688_v54 }
  0xaa   : > { %713 = vrot.lane.b32.xlu2 %v2667_v30, %s2308_s22  ;;  %711 = vrot.lane.b32.xlu1 %v2670_v60, %s2308_s22  ;;  %v214_v30 = vld [vmem:[%s2355_s20 + $0x38] sm:$0xff] }
  0xab   : > { %709 = vrot.lane.b32.xlu0 %v2673_v35, %s2308_s22 }
  0xac   : > { %v2681_v44 = vpop.permute.xlu2 %583  ;;  %v2683_v48 = vpop.permute.xlu1 %563 }
  0xad   : > { %4045 = vst [vmem:[#allocation21_spill] sm:$0xff] %v2681_v44  ;;  %v2685_v61 = vpop.permute.xlu0 %561 }
  0xae   : > { %4046 = vst [vmem:[#allocation22_spill] sm:$0xff] %v2683_v48 }
  0xaf   : > { %4047 = vst [vmem:[#allocation23_spill] sm:$0xff] %v2685_v61 }
  0xb2   : > { %719 = vrot.lane.b32.xlu2 %v2688_v54, %s2308_s22  ;;  %717 = vrot.lane.b32.xlu1 %v2691_v49, %s2308_s22  ;;  %v2715_v54 = vld [vmem:[%s2355_s20 + $0x20] sm:$0xff]  ;;  %v213_v49 = vld [vmem:[%s2355_s20 + $0x30] sm:$0xff] }
  0xb3   : > { %715 = vrot.lane.b32.xlu0 %v2694_v50, %s2308_s22  ;;  %4056 = vst [vmem:[#allocation32_spill] sm:$0xff] %v2715_v54  ;;  %v2731_v50 = vld [vmem:[%s2355_s20 + $0x48] sm:$0xff] }
  0xb4   : > { %v2702_v44 = vpop.permute.xlu2 %589  ;;  %v2704_v61 = vpop.permute.xlu1 %569  ;;  %4060 = vst [vmem:[#allocation36_spill] sm:$0xff] %v2731_v50 }
  0xb5   : > { %4051 = vst [vmem:[#allocation27_spill] sm:$0xff] %v2702_v44  ;;  %v2706_v48 = vpop.permute.xlu0 %567 }
  0xb6   : > { %4052 = vst [vmem:[#allocation28_spill] sm:$0xff] %v2704_v61 }
  0xb7   : > { %4053 = vst [vmem:[#allocation29_spill] sm:$0xff] %v2706_v48 }
  0xba   : > { %789 = vrot.lane.b32.xlu2 %v2715_v54, %s2309_s23  ;;  %787 = vrot.lane.b32.xlu1 %v2712_v55, %s2309_s23  ;;  %v217_v54 = vld [vmem:[%s2355_s20 + $0x60] sm:$0xff] }
  0xbb   : > { %721 = vrot.lane.b32.xlu0 %v2709_v62, %s2308_s22 }
  0xbc   : > { %v2723_v44 = vpop.permute.xlu2 %659  ;;  %v2725_v61 = vpop.permute.xlu1 %575 }
  0xbd   : > { %4057 = vst [vmem:[#allocation33_spill] sm:$0xff] %v2723_v44  ;;  %v2727_v48 = vpop.permute.xlu0 %573 }
  0xbe   : > { %4058 = vst [vmem:[#allocation34_spill] sm:$0xff] %v2725_v61  ;;  %v2749_v61 = vld [vmem:[%s2355_s20 + $0x50] sm:$0xff] }
  0xbf   : > { %4059 = vst [vmem:[#allocation35_spill] sm:$0xff] %v2727_v48  ;;  %v2746_v48 = vld [vmem:[%s2355_s20 + $0x68] sm:$0xff] }
  0xc0   : > { %4064 = vst [vmem:[#allocation40_spill] sm:$0xff] %v2746_v48 }
  0xc1   : > { %4065 = vst [vmem:[#allocation41_spill] sm:$0xff] %v2749_v61 }
  0xc2   : > { %795 = vrot.lane.b32.xlu2 %v2731_v50, %s2309_s23  ;;  %793 = vrot.lane.b32.xlu1 %v214_v30, %s2309_s23 }
  0xc3   : > { %791 = vrot.lane.b32.xlu0 %v213_v49, %s2309_s23 }
  0xc4   : > { %v2738_v55 = vpop.permute.xlu2 %665  ;;  %v2740_v44 = vpop.permute.xlu1 %581 }
  0xc5   : > { %4061 = vst [vmem:[#allocation37_spill] sm:$0xff] %v2738_v55  ;;  %v2742_v62 = vpop.permute.xlu0 %579  ;;  %v2767_v55 = vld [vmem:[%s2355_s20 + $0x78] sm:$0xff] }
  0xc6   : > { %4062 = vst [vmem:[#allocation38_spill] sm:$0xff] %v2740_v44  ;;  %v2764_v44 = vld [vmem:[%s2355_s20 + $0x90] sm:$0xff] }
  0xc7   : > { %4063 = vst [vmem:[#allocation39_spill] sm:$0xff] %v2742_v62  ;;  %v220_v62 = vld [vmem:[%s2355_s20 + $0x80] sm:$0xff] }
  0xc8   : > { %4069 = vst [vmem:[#allocation45_spill] sm:$0xff] %v2764_v44 }
  0xc9   : > { %4070 = vst [vmem:[#allocation46_spill] sm:$0xff] %v2767_v55 }
  0xca   : > { %801 = vrot.lane.b32.xlu2 %v2746_v48, %s2309_s23  ;;  %799 = vrot.lane.b32.xlu1 %v217_v54, %s2309_s23 }
  0xcb   : > { %797 = vrot.lane.b32.xlu0 %v2749_v61, %s2309_s23 }
  0xcc   : > { %v2756_v49 = vpop.permute.xlu2 %671  ;;  %v2758_v30 = vpop.permute.xlu1 %587 }
  0xcd   : > { %4066 = vst [vmem:[#allocation42_spill] sm:$0xff] %v2756_v49  ;;  %v2760_v50 = vpop.permute.xlu0 %585  ;;  %v2787_v49 = vld [vmem:[%s2355_s20 + $0x98] sm:$0xff] }
  0xce   : > { %4067 = vst [vmem:[#allocation43_spill] sm:$0xff] %v2758_v30  ;;  %v2784_v30 = vld [vmem:[%s2355_s20 + $0xb0] sm:$0xff] }
  0xcf   : > { %4068 = vst [vmem:[#allocation44_spill] sm:$0xff] %v2760_v50  ;;  %v2781_v50 = vld [vmem:[%s2355_s20 + $0xa8] sm:$0xff] }
  0xd0   : > { %4074 = vst [vmem:[#allocation50_spill] sm:$0xff] %v2781_v50 }
  0xd1   : > { %4075 = vst [vmem:[#allocation51_spill] sm:$0xff] %v2784_v30 }
  0xd2   : > { %807 = vrot.lane.b32.xlu2 %v2764_v44, %s2309_s23  ;;  %805 = vrot.lane.b32.xlu1 %v220_v62, %s2309_s23  ;;  %4076 = vst [vmem:[#allocation52_spill] sm:$0xff] %v2787_v49  ;;  %v2805_v44 = vld [vmem:[%s2355_s20 + $0xd8] sm:$0xff] }
  0xd3   : > { %803 = vrot.lane.b32.xlu0 %v2767_v55, %s2309_s23  ;;  %v2802_v55 = vld [vmem:[%s2355_s20 + $0xc8] sm:$0xff]  ;;  %4081 = vst [vmem:[#allocation57_spill] sm:$0xff] %v2805_v44 }
  0xd4   : > { %v2774_v54 = vpop.permute.xlu2 %677  ;;  %v2776_v61 = vpop.permute.xlu1 %593  ;;  %4080 = vst [vmem:[#allocation56_spill] sm:$0xff] %v2802_v55 }
  0xd5   : > { %4071 = vst [vmem:[#allocation47_spill] sm:$0xff] %v2774_v54  ;;  %v2778_v48 = vpop.permute.xlu0 %591  ;;  %v2808_v54 = vld [vmem:[%s2355_s20 + $0xc0] sm:$0xff] }
  0xd6   : > { %4072 = vst [vmem:[#allocation48_spill] sm:$0xff] %v2776_v61 }
  0xd7   : > { %4073 = vst [vmem:[#allocation49_spill] sm:$0xff] %v2778_v48 }
  0xd8   : > { %4082 = vst [vmem:[#allocation58_spill] sm:$0xff] %v2808_v54 }
  0xda   : > { %813 = vrot.lane.b32.xlu2 %v2784_v30, %s2309_s23  ;;  %811 = vrot.lane.b32.xlu1 %v2781_v50, %s2309_s23 }
  0xdb   : > { %809 = vrot.lane.b32.xlu0 %v2787_v49, %s2309_s23  ;;  %v2823_v49 = vld [vmem:[%s2355_s20 + $0xf0] sm:$0xff] }
  0xdc   : > { %v2795_v62 = vpop.permute.xlu2 %683  ;;  %v2797_v48 = vpop.permute.xlu1 %663  ;;  %4086 = vst [vmem:[#allocation62_spill] sm:$0xff] %v2823_v49 }
  0xdd   : > { %4077 = vst [vmem:[#allocation53_spill] sm:$0xff] %v2795_v62  ;;  %v2799_v61 = vpop.permute.xlu0 %661  ;;  %v2829_v62 = vld [vmem:[%s2355_s20 + $0xe0] sm:$0xff] }
  0xde   : > { %4078 = vst [vmem:[#allocation54_spill] sm:$0xff] %v2797_v48  ;;  %v2826_v48 = vld [vmem:[%s2355_s20 + $0xf8] sm:$0xff] }
  0xdf   : > { %4079 = vst [vmem:[#allocation55_spill] sm:$0xff] %v2799_v61 }
  0xe0   : > { %4087 = vst [vmem:[#allocation63_spill] sm:$0xff] %v2826_v48 }
  0xe1   : > { %4088 = vst [vmem:[#allocation64_spill] sm:$0xff] %v2829_v62 }
  0xe2   : > { %819 = vrot.lane.b32.xlu2 %v2805_v44, %s2309_s23  ;;  %817 = vrot.lane.b32.xlu1 %v2802_v55, %s2309_s23  ;;  %v2844_v55 = vld [vmem:[%s2355_s20 + $0x110] sm:$0xff]  ;;  %v2850_v44 = vld [vmem:[%s2355_s20 + $0x108] sm:$0xff] }
  0xe3   : > { %815 = vrot.lane.b32.xlu0 %v2808_v54, %s2309_s23  ;;  %4092 = vst [vmem:[#allocation68_spill] sm:$0xff] %v2844_v55  ;;  %v2847_v54 = vld [vmem:[%s2355_s20 + $0x120] sm:$0xff] }
  0xe4   : > { %v2816_v50 = vpop.permute.xlu2 %689  ;;  %v2818_v61 = vpop.permute.xlu1 %669  ;;  %4093 = vst [vmem:[#allocation69_spill] sm:$0xff] %v2847_v54 }
  0xe5   : > { %4083 = vst [vmem:[#allocation59_spill] sm:$0xff] %v2816_v50  ;;  %v2820_v30 = vpop.permute.xlu0 %667 }
  0xe6   : > { %4084 = vst [vmem:[#allocation60_spill] sm:$0xff] %v2818_v61 }
  0xe7   : > { %4085 = vst [vmem:[#allocation61_spill] sm:$0xff] %v2820_v30 }
  0xe8   : > { %4094 = vst [vmem:[#allocation70_spill] sm:$0xff] %v2850_v44 }
  0xea   : > { %825 = vrot.lane.b32.xlu2 %v2826_v48, %s2309_s23  ;;  %823 = vrot.lane.b32.xlu1 %v2823_v49, %s2309_s23  ;;  %v2868_v48 = vld [vmem:[%s2355_s20 + $0x140] sm:$0xff] }
  0xeb   : > { %821 = vrot.lane.b32.xlu0 %v2829_v62, %s2309_s23  ;;  %4099 = vst [vmem:[#allocation75_spill] sm:$0xff] %v2868_v48  ;;  %v2871_v62 = vld [vmem:[%s2355_s20 + $0x128] sm:$0xff] }
  0xec   : > { %v2837_v61 = vpop.permute.xlu2 %695  ;;  %v2839_v30 = vpop.permute.xlu1 %675  ;;  %4100 = vst [vmem:[#allocation76_spill] sm:$0xff] %v2871_v62 }
  0xed   : > { %4089 = vst [vmem:[#allocation65_spill] sm:$0xff] %v2837_v61  ;;  %v2841_v50 = vpop.permute.xlu0 %673  ;;  %v2865_v61 = vld [vmem:[%s2355_s20 + $0x138] sm:$0xff] }
  0xee   : > { %4090 = vst [vmem:[#allocation66_spill] sm:$0xff] %v2839_v30 }
  0xef   : > { %4091 = vst [vmem:[#allocation67_spill] sm:$0xff] %v2841_v50 }
  0xf0   : > { %4098 = vst [vmem:[#allocation74_spill] sm:$0xff] %v2865_v61 }
  0xf2   : > { %831 = vrot.lane.b32.xlu2 %v2847_v54, %s2309_s23  ;;  %829 = vrot.lane.b32.xlu1 %v2844_v55, %s2309_s23  ;;  %v2886_v54 = vld [vmem:[%s2355_s20 + $0x158] sm:$0xff] }
  0xf3   : > { %827 = vrot.lane.b32.xlu0 %v2850_v44, %s2309_s23  ;;  %4104 = vst [vmem:[#allocation80_spill] sm:$0xff] %v2886_v54  ;;  %v2892_v44 = vld [vmem:[%s2355_s20 + $0x150] sm:$0xff] }
  0xf4   : > { %v2858_v30 = vpop.permute.xlu2 %701  ;;  %v2860_v49 = vpop.permute.xlu1 %681 }
  0xf5   : > { %4095 = vst [vmem:[#allocation71_spill] sm:$0xff] %v2858_v30  ;;  %v2862_v50 = vpop.permute.xlu0 %679  ;;  %v2889_v30 = vld [vmem:[%s2355_s20 + $0x168] sm:$0xff] }
  0xf6   : > { %4096 = vst [vmem:[#allocation72_spill] sm:$0xff] %v2860_v49 }
  0xf7   : > { %4097 = vst [vmem:[#allocation73_spill] sm:$0xff] %v2862_v50 }
  0xf8   : > { %4105 = vst [vmem:[#allocation81_spill] sm:$0xff] %v2889_v30 }
  0xfa   : > { %837 = vrot.lane.b32.xlu2 %v2868_v48, %s2309_s23  ;;  %835 = vrot.lane.b32.xlu1 %v2865_v61, %s2309_s23  ;;  %v2907_v48 = vld [vmem:[%s2355_s20 + $0x188] sm:$0xff] }
  0xfb   : > { %833 = vrot.lane.b32.xlu0 %v2871_v62, %s2309_s23  ;;  %v2913_v62 = vld [vmem:[%s2355_s20 + $0x170] sm:$0xff] }
  0xfc   : > { %v2879_v49 = vpop.permute.xlu2 %707  ;;  %v2881_v55 = vpop.permute.xlu1 %687  ;;  %4109 = vst [vmem:[#allocation85_spill] sm:$0xff] %v2913_v62 }
  0xfd   : > { %4101 = vst [vmem:[#allocation77_spill] sm:$0xff] %v2879_v49  ;;  %v2883_v50 = vpop.permute.xlu0 %685  ;;  %v2910_v49 = vld [vmem:[%s2355_s20 + $0x180] sm:$0xff] }
  0xfe   : > { %4102 = vst [vmem:[#allocation78_spill] sm:$0xff] %v2881_v55 }
  0xff   : > { %4103 = vst [vmem:[#allocation79_spill] sm:$0xff] %v2883_v50 }
 0x100   : > { %4108 = vst [vmem:[#allocation84_spill] sm:$0xff] %v2910_v49 }
 0x102   : > { %843 = vrot.lane.b32.xlu2 %v2889_v30, %s2309_s23  ;;  %841 = vrot.lane.b32.xlu1 %v2886_v54, %s2309_s23 }
 0x103   : > { %839 = vrot.lane.b32.xlu0 %v2892_v44, %s2309_s23 }
 0x104   : > { %v2900_v61 = vpop.permute.xlu2 %713  ;;  %v2902_v55 = vpop.permute.xlu1 %693 }
 0x105   : > { %4106 = vst [vmem:[#allocation82_spill] sm:$0xff] %v2902_v55  ;;  %v2904_v50 = vpop.permute.xlu0 %691 }
 0x106   : > { %4107 = vst [vmem:[#allocation83_spill] sm:$0xff] %v2904_v50 }
 0x10a   : > { %849 = vrot.lane.b32.xlu2 %v2907_v48, %s2309_s23  ;;  %847 = vrot.lane.b32.xlu1 %v2910_v49, %s2309_s23 }
 0x10b   : > { %845 = vrot.lane.b32.xlu0 %v2913_v62, %s2309_s23 }
 0x10c   : > { %v2921_v54 = vpop.permute.xlu2 %719  ;;  %v2923_v30 = vpop.permute.xlu1 %699 }
 0x10d   : > { %4110 = vst [vmem:[#allocation86_spill] sm:$0xff] %v2921_v54  ;;  %v2925_v50 = vpop.permute.xlu0 %697 }
 0x112   : > { %919 = vrot.lane.b32.xlu2 %v2358_v0, %s2310_s24  ;;  %917 = vrot.lane.b32.xlu1 %v2373_v4, %s2310_s24 }
 0x113   : > { %915 = vrot.lane.b32.xlu0 %v2361_v1, %s2310_s24 }
 0x114   : > { %v2933_v55 = vpop.permute.xlu2 %789  ;;  %v2935_v49 = vpop.permute.xlu1 %705 }
 0x115   : > { %4111 = vst [vmem:[#allocation87_spill] sm:$0xff] %v2933_v55  ;;  %v2937_v62 = vpop.permute.xlu0 %703  ;;  %v3051_v55 = vld [vmem:[%s2355_s20 + $0x181] sm:$0xff] }
 0x11a   : > { %925 = vrot.lane.b32.xlu2 %v2385_v7, %s2310_s24  ;;  %923 = vrot.lane.b32.xlu1 %v2388_v8, %s2310_s24 }
 0x11b   : > { %921 = vrot.lane.b32.xlu0 %v2370_v3, %s2310_s24 }
 0x11c   : > { %v2945_v0 = vpop.permute.xlu2 %795  ;;  %v2947_v4 = vpop.permute.xlu1 %711 }
 0x11d   : > { %4112 = vst [vmem:[#allocation88_spill] sm:$0xff] %v2945_v0  ;;  %v2949_v1 = vpop.permute.xlu0 %709 }
 0x122   : > { %931 = vrot.lane.b32.xlu2 %v2400_v10, %s2310_s24  ;;  %929 = vrot.lane.b32.xlu1 %v2403_v11, %s2310_s24 }
 0x123   : > { %927 = vrot.lane.b32.xlu0 %v2382_v6, %s2310_s24 }
 0x124   : > { %v2957_v7 = vpop.permute.xlu2 %801  ;;  %v2959_v8 = vpop.permute.xlu1 %717 }
 0x125   : > { %4113 = vst [vmem:[#allocation89_spill] sm:$0xff] %v2959_v8  ;;  %v2961_v3 = vpop.permute.xlu0 %715  ;;  %v4137_v8 = vld [vmem:[#allocation34_spill] sm:$0xff] }
 0x12a   : > { %937 = vrot.lane.b32.xlu2 %v2415_v13, %s2310_s24  ;;  %935 = vrot.lane.b32.xlu1 %v2418_v14, %s2310_s24 }
 0x12b   : > { %933 = vrot.lane.b32.xlu0 %v2397_v9, %s2310_s24 }
 0x12c   : > { %v2969_v10 = vpop.permute.xlu2 %807  ;;  %v2971_v11 = vpop.permute.xlu1 %787 }
 0x12d   : > { %4114 = vst [vmem:[#allocation90_spill] sm:$0xff] %v2971_v11  ;;  %v2973_v6 = vpop.permute.xlu0 %721  ;;  %v3048_v11 = vld [vmem:[%s2355_s20 + $0x189] sm:$0xff] }
 0x12e   : > { %4115 = vst [vmem:[#allocation91_spill] sm:$0xff] %v2973_v6 }
 0x132   : > { %943 = vrot.lane.b32.xlu2 %v2430_v16, %s2310_s24  ;;  %941 = vrot.lane.b32.xlu1 %v2433_v17, %s2310_s24 }
 0x133   : > { %939 = vrot.lane.b32.xlu0 %v2412_v12, %s2310_s24 }
 0x134   : > { %v2981_v13 = vpop.permute.xlu2 %813  ;;  %v2983_v14 = vpop.permute.xlu1 %793 }
 0x135   : > { %v2985_v9 = vpop.permute.xlu0 %791 }
 0x13a   : > { %949 = vrot.lane.b32.xlu2 %v2445_v19, %s2310_s24  ;;  %947 = vrot.lane.b32.xlu1 %v2448_v20, %s2310_s24 }
 0x13b   : > { %945 = vrot.lane.b32.xlu0 %v2427_v15, %s2310_s24 }
 0x13c   : > { %v2993_v16 = vpop.permute.xlu2 %819  ;;  %v2995_v17 = vpop.permute.xlu1 %799 }
 0x13d   : > { %v2997_v12 = vpop.permute.xlu0 %797 }
 0x13e   : > { %4116 = vst [vmem:[#allocation92_spill] sm:$0xff] %v2997_v12 }
 0x142   : > { %955 = vrot.lane.b32.xlu2 %v2460_v22, %s2310_s24  ;;  %953 = vrot.lane.b32.xlu1 %v2463_v23, %s2310_s24 }
 0x143   : > { %951 = vrot.lane.b32.xlu0 %v2442_v18, %s2310_s24 }
 0x144   : > { %v3005_v19 = vpop.permute.xlu2 %825  ;;  %v3007_v20 = vpop.permute.xlu1 %805 }
 0x145   : > { %v3009_v15 = vpop.permute.xlu0 %803 }
 0x146   : > { %4117 = vst [vmem:[#allocation93_spill] sm:$0xff] %v3009_v15  ;;  %v3175_v15 = vld [vmem:[%s2355_s20 + $0x18a] sm:$0xff] }
 0x14a   : > { %961 = vrot.lane.b32.xlu2 %v2475_v25, %s2310_s24  ;;  %959 = vrot.lane.b32.xlu1 %v2478_v26, %s2310_s24 }
 0x14b   : > { %957 = vrot.lane.b32.xlu0 %v2457_v21, %s2310_s24 }
 0x14c   : > { %v3017_v22 = vpop.permute.xlu2 %831  ;;  %v3019_v18 = vpop.permute.xlu1 %811 }
 0x14d   : > { %v3021_v23 = vpop.permute.xlu0 %809 }
 0x14e   : > { %4118 = vst [vmem:[#allocation94_spill] sm:$0xff] %v3021_v23  ;;  %v2205_v23 = vld [vmem:[%s2355_s20 + $0x1a1] sm:$0xff] }
 0x152   : > { %967 = vrot.lane.b32.xlu2 %v2490_v28, %s2310_s24  ;;  %965 = vrot.lane.b32.xlu1 %v2493_v29, %s2310_s24 }
 0x153   : > { %963 = vrot.lane.b32.xlu0 %v2472_v24, %s2310_s24 }
 0x154   : > { %v3029_v25 = vpop.permute.xlu2 %837  ;;  %v3031_v21 = vpop.permute.xlu1 %817 }
 0x155   : > { %4119 = vst [vmem:[#allocation95_spill] sm:$0xff] %v3031_v21  ;;  %v3033_v26 = vpop.permute.xlu0 %815  ;;  %v4147_v21 = vld [vmem:[#allocation76_spill] sm:$0xff] }
 0x156   : > { %4120 = vst [vmem:[#allocation96_spill] sm:$0xff] %v3033_v26  ;;  %v4140_v26 = vld [vmem:[#allocation63_spill] sm:$0xff] }
 0x15a   : > { %973 = vrot.lane.b32.xlu2 %v2503_v31, %s2310_s24  ;;  %971 = vrot.lane.b32.xlu1 %v2506_v32, %s2310_s24 }
 0x15b   : > { %969 = vrot.lane.b32.xlu0 %v2487_v27, %s2310_s24 }
 0x15c   : > { %v3041_v28 = vpop.permute.xlu2 %843  ;;  %v3043_v29 = vpop.permute.xlu1 %823 }
 0x15d   : > { %v3045_v24 = vpop.permute.xlu0 %821 }
 0x162   : > { %1043 = vrot.lane.b32.xlu2 %v2517_v34, %s2311_s25  ;;  %977 = vrot.lane.b32.xlu1 %v3048_v11, %s2310_s24 }
 0x163   : > { %975 = vrot.lane.b32.xlu0 %v3051_v55, %s2310_s24 }
 0x164   : > { %v3059_v27 = vpop.permute.xlu2 %849  ;;  %v3061_v31 = vpop.permute.xlu1 %829 }
 0x165   : > { %4121 = vst [vmem:[#allocation97_spill] sm:$0xff] %v3059_v27  ;;  %v3063_v32 = vpop.permute.xlu0 %827 }
 0x16a   : > { %1049 = vrot.lane.b32.xlu2 %v2531_v38, %s2311_s25  ;;  %1047 = vrot.lane.b32.xlu1 %v2534_v39, %s2311_s25 }
 0x16b   : > { %1045 = vrot.lane.b32.xlu0 %v2514_v33, %s2311_s25 }
 0x16c   : > { %v3071_v34 = vpop.permute.xlu2 %919  ;;  %v3073_v0 = vpop.permute.xlu1 %835 }
 0x16d   : > { %v3075_v12 = vpop.permute.xlu0 %833 }
 0x172   : > { %1055 = vrot.lane.b32.xlu2 %v2548_v42, %s2311_s25  ;;  %1053 = vrot.lane.b32.xlu1 %v2551_v43, %s2311_s25 }
 0x173   : > { %1051 = vrot.lane.b32.xlu0 %v2528_v37, %s2311_s25 }
 0x174   : > { %v3083_v38 = vpop.permute.xlu2 %925  ;;  %v3085_v39 = vpop.permute.xlu1 %841 }
 0x175   : > { %4122 = vst [vmem:[#allocation98_spill] sm:$0xff] %v3083_v38  ;;  %v3087_v33 = vpop.permute.xlu0 %839 }
 0x17a   : > { %1061 = vrot.lane.b32.xlu2 %v2565_v46, %s2311_s25  ;;  %1059 = vrot.lane.b32.xlu1 %v2568_v47, %s2311_s25 }
 0x17b   : > { %1057 = vrot.lane.b32.xlu0 %v2545_v41, %s2311_s25 }
 0x17c   : > { %v3095_v42 = vpop.permute.xlu2 %931  ;;  %v3097_v43 = vpop.permute.xlu1 %847 }
 0x17d   : > { %4123 = vst [vmem:[#allocation99_spill] sm:$0xff] %v3095_v42  ;;  %v3099_v37 = vpop.permute.xlu0 %845  ;;  %v2173_v42 = vld [vmem:[%s2355_s20 + $0x1a0] sm:$0xff] }
 0x17e   : > { %4124 = vst [vmem:[#allocation100_spill] sm:$0xff] %v3097_v43 }
 0x17f   : > { %4125 = vst [vmem:[#allocation101_spill] sm:$0xff] %v3099_v37  ;;  %v2189_v37 = vld [vmem:[%s2355_s20 + $0xe1] sm:$0xff] }
 0x182   : > { %1067 = vrot.lane.b32.xlu2 %v2586_v52, %s2311_s25  ;;  %1065 = vrot.lane.b32.xlu1 %v2589_v53, %s2311_s25 }
 0x183   : > { %1063 = vrot.lane.b32.xlu0 %v2562_v45, %s2311_s25 }
 0x184   : > { %v3107_v46 = vpop.permute.xlu2 %937  ;;  %v3109_v47 = vpop.permute.xlu1 %917 }
 0x185   : > { %4126 = vst [vmem:[#allocation102_spill] sm:$0xff] %v3107_v46  ;;  %v3111_v41 = vpop.permute.xlu0 %915 }
 0x186   : > { %4127 = vst [vmem:[#allocation103_spill] sm:$0xff] %v3109_v47  ;;  %v4131_v47 = vld [vmem:[#allocation25_spill] sm:$0xff] }
 0x187   : > { %4128 = vst [vmem:[#allocation104_spill] sm:$0xff] %v3111_v41 }
 0x18a   : > { %1073 = vrot.lane.b32.xlu2 %v2607_v58, %s2311_s25  ;;  %1071 = vrot.lane.b32.xlu1 %v2610_v59, %s2311_s25 }
 0x18b   : > { %1069 = vrot.lane.b32.xlu0 %v2583_v51, %s2311_s25 }
 0x18c   : > { %v3119_v52 = vpop.permute.xlu2 %943  ;;  %v3121_v53 = vpop.permute.xlu1 %923 }
 0x18d   : > { %4129 = vst [vmem:[#allocation105_spill] sm:$0xff] %v3119_v52  ;;  %v3123_v45 = vpop.permute.xlu0 %921  ;;  %v4138_v52 = vld [vmem:[#allocation70_spill] sm:$0xff] }
 0x18e   : > { %4130 = vst [vmem:[#allocation106_spill] sm:$0xff] %v3121_v53  ;;  %v4132_v53 = vld [vmem:[#allocation26_spill] sm:$0xff] }
 0x192   : > { %1079 = vrot.lane.b32.xlu2 %v2628_v2, %s2311_s25  ;;  %1077 = vrot.lane.b32.xlu1 %v2631_v5, %s2311_s25 }
 0x193   : > { %1075 = vrot.lane.b32.xlu0 %v2604_v57, %s2311_s25 }
 0x194   : > { %v3131_v58 = vpop.permute.xlu2 %949  ;;  %v3133_v59 = vpop.permute.xlu1 %929 }
 0x195   : > { %v3135_v51 = vpop.permute.xlu0 %927 }
 0x19a   : > { %1085 = vrot.lane.b32.xlu2 %v2649_v36, %s2311_s25  ;;  %1083 = vrot.lane.b32.xlu1 %v2652_v40, %s2311_s25 }
 0x19b   : > { %1081 = vrot.lane.b32.xlu0 %v2625_v63, %s2311_s25 }
 0x19c   : > { %v3143_v2 = vpop.permute.xlu2 %955  ;;  %v3145_v57 = vpop.permute.xlu1 %935 }
 0x19d   : > { %v3147_v41 = vpop.permute.xlu0 %933 }
 0x1a2   : > { %1091 = vrot.lane.b32.xlu2 %v2670_v60, %s2311_s25  ;;  %1089 = vrot.lane.b32.xlu1 %v2673_v35, %s2311_s25  ;;  %v4133_v60 = vld [vmem:[#allocation20_spill] sm:$0xff] }
 0x1a3   : > { %1087 = vrot.lane.b32.xlu0 %v2646_v56, %s2311_s25 }
 0x1a4   : > { %v3155_v36 = vpop.permute.xlu2 %961  ;;  %v3157_v40 = vpop.permute.xlu1 %941 }
 0x1a5   : > { %v3159_v63 = vpop.permute.xlu0 %939 }
 0x1aa   : > { %1097 = vrot.lane.b32.xlu2 %v4131_v47, %s2311_s25  ;;  %1095 = vrot.lane.b32.xlu1 %v4132_v53, %s2311_s25  ;;  %v4135_v47 = vld [vmem:[#allocation64_spill] sm:$0xff] }
 0x1ab   : > { %1093 = vrot.lane.b32.xlu0 %v4133_v60, %s2311_s25 }
 0x1ac   : > { %v3167_v35 = vpop.permute.xlu2 %967  ;;  %v3169_v56 = vpop.permute.xlu1 %947 }
 0x1ad   : > { %v3171_v38 = vpop.permute.xlu0 %945 }
 0x1ae   : > { %4134 = vst [vmem:[#allocation25_spill] sm:$0xff] %v3171_v38  ;;  %v4146_v38 = vld [vmem:[#allocation38_spill] sm:$0xff] }
 0x1b2   : > { %1233 = vrot.lane.b32.xlu2 %v2173_v42, %s2312_s26  ;;  %1201 = vrot.lane.b32.xlu1 %v4135_v47, %s2312_s26  ;;  %v1546_v42 = vsel %vm1523_vm0, %v4138_v52, %v4137_v8  ;;  %v4141_v8 = vld [vmem:[#allocation71_spill] sm:$0xff] }
 0x1b3   : > { %1105 = vrot.lane.b32.xlu0 %v3175_v15, %s2311_s25  ;;  %v1579_v54 = vsel %vm1556_vm1, %v1546_v42, %v2937_v62  ;;  %v4143_v42 = vld [vmem:[#allocation9_spill] sm:$0xff] }
 0x1b4   : > { %v3182_v53 = vpop.permute.xlu2 %973  ;;  %v3184_v60 = vpop.permute.xlu1 %953 }
 0x1b5   : > { %4136 = vst [vmem:[#allocation26_spill] sm:$0xff] %v3182_v53  ;;  %v3186_v46 = vpop.permute.xlu0 %951  ;;  %v4139_v53 = vld [vmem:[#allocation35_spill] sm:$0xff] }
 0x1b6   : > { %v1545_v43 = vsel %vm1523_vm0, %v4140_v26, %v4139_v53 }
 0x1b7   : > { %v1578_v52 = vsel %vm1556_vm1, %v1545_v43, %v4141_v8  ;;  %v2237_v43 = vld [vmem:[%s2355_s20 + $0x1a2] sm:$0xff]  ;;  %v4144_v8 = vld [vmem:[#allocation32_spill] sm:$0xff] }
 0x1b8   : > { %v1611_v6 = vsel %vm1589_vm2, %v1578_v52, %v3061_v31  ;;  %v1549_v31 = vsel %vm1523_vm0, %v4147_v21, %v4146_v38  ;;  %v4148_v52 = vld [vmem:[#allocation57_spill] sm:$0xff] }
 0x1b9   : > { %v4151_v21 = vld [vmem:[#allocation77_spill] sm:$0xff] }
 0x1ba   : > { %1457 = vrot.lane.b32.xlu2 %v2631_v5, %s2313_s27  ;;  %1361 = vrot.lane.b32.xlu1 %v2205_v23, %s2314_s28  ;;  %v1612_v5 = vsel %vm1589_vm2, %v1579_v54, %v3017_v22  ;;  %v1527_v54 = vsel %vm1523_vm0, %v4144_v8, %v4143_v42  ;;  %v4145_v22 = vld [vmem:[#allocation37_spill] sm:$0xff] }
 0x1bb   : > { %1329 = vrot.lane.b32.xlu0 %v2189_v37, %s2314_s28  ;;  %v3217_v37 = vld [vmem:[%s2355_s20 + $0x182] sm:$0xff] }
 0x1bc   : > { %v3206_v27 = vpop.permute.xlu2 %1043  ;;  %v960_v23 = vpop.permute.xlu1 %959 }
 0x1bd   : > { %4142 = vst [vmem:[#allocation20_spill] sm:$0xff] %v3206_v27  ;;  %v3211_v26 = vsel %vm1622_vm3, %v1612_v5, %v960_v23  ;;  %v958_v53 = vpop.permute.xlu0 %957  ;;  %v1560_v27 = vsel %vm1556_vm1, %v1527_v54, %v4145_v22  ;;  %v4150_v5 = vld [vmem:[#allocation69_spill] sm:$0xff] }
 0x1be   : > { %v3214_v62 = vsel %vm1622_vm3, %v1611_v6, %v958_v53  ;;  %v4149_v6 = vld [vmem:[#allocation39_spill] sm:$0xff]  ;;  %v1582_v53 = vsel %vm1556_vm1, %v1549_v31, %v2949_v1  ;;  %v1593_v42 = vsel %vm1589_vm2, %v1560_v27, %v2983_v14 }
 0x1bf   : > { %v1548_v23 = vsel %vm1523_vm0, %v4150_v5, %v4149_v6  ;;  %v1615_v8 = vsel %vm1589_vm2, %v1582_v53, %v3029_v25  ;;  %v1626_v54 = vsel %vm1622_vm3, %v1593_v42, %v3123_v45  ;;  %v2204_v25 = vld [vmem:[%s2355_s20 + $0x199] sm:$0xff]  ;;  %v4153_v53 = vld [vmem:[#allocation36_spill] sm:$0xff] }
 0x1c0   : > { %v1581_v38 = vsel %vm1556_vm1, %v1548_v23, %v4151_v21  ;;  %v2188_v5 = vld [vmem:[%s2355_s20 + $0xd9] sm:$0xff] }
 0x1c1   : > { %v1614_v1 = vsel %vm1589_vm2, %v1581_v38, %v3073_v0  ;;  %v2172_v23 = vld [vmem:[%s2355_s20 + $0x198] sm:$0xff]  ;;  %v4154_v21 = vld [vmem:[#allocation42_spill] sm:$0xff]  ;;  %v4155_v38 = vld [vmem:[#allocation43_spill] sm:$0xff] }
 0x1c2   : > { %1199 = vrot.lane.b32.xlu2 %v4148_v52, %s2312_s26  ;;  %1103 = vrot.lane.b32.xlu1 %v3217_v37, %s2311_s25  ;;  %v4152_v45 = vld [vmem:[#allocation13_spill] sm:$0xff] }
 0x1c3   : > { %1489 = vrot.lane.b32.xlu0 %v2237_v43, %s2313_s27  ;;  %v1530_v42 = vsel %vm1523_vm0, %v4153_v53, %v4152_v45 }
 0x1c4   : > { %v1050_v22 = vpop.permute.xlu2 %1049  ;;  %v966_v6 = vpop.permute.xlu1 %965  ;;  %v1563_v0 = vsel %vm1556_vm1, %v1530_v42, %v4154_v21  ;;  %v2220_v21 = vld [vmem:[%s2355_s20 + $0xda] sm:$0xff] }
 0x1c5   : > { %v3249_v31 = vsel %vm1655_vm4, %v1626_v54, %v1050_v22  ;;  %v3252_v14 = vsel %vm1622_vm3, %v1615_v8, %v966_v6  ;;  %v964_v27 = vpop.permute.xlu0 %963  ;;  %v1552_v54 = vsel %vm1523_vm0, %v2892_v44, %v4155_v38  ;;  %v4156_v8 = vld [vmem:[#allocation44_spill] sm:$0xff]  ;;  %v4157_v22 = vld [vmem:[#allocation75_spill] sm:$0xff] }
 0x1c6   : > { %v3255_v43 = vsel %vm1622_vm3, %v1614_v1, %v964_v27  ;;  %v1551_v6 = vsel %vm1523_vm0, %v4157_v22, %v4156_v8  ;;  %v1585_v1 = vsel %vm1556_vm1, %v1552_v54, %v2961_v3  ;;  %v1596_v27 = vsel %vm1589_vm2, %v1563_v0, %v2995_v17  ;;  %v4159_v0 = vld [vmem:[#allocation40_spill] sm:$0xff]  ;;  %v4160_v54 = vld [vmem:[#allocation47_spill] sm:$0xff]  ;;  %v4161_v8 = vld [vmem:[#allocation30_spill] sm:$0xff] }
 0x1c7   : > { %v1584_v44 = vsel %vm1556_vm1, %v1551_v6, %v2900_v61 }
 0x1c8   : > { %v1617_v42 = vsel %vm1589_vm2, %v1584_v44, %v3085_v39 }
 0x1ca   : > { %1359 = vrot.lane.b32.xlu2 %v2204_v25, %s2314_s28  ;;  %1327 = vrot.lane.b32.xlu1 %v2188_v5, %s2314_s28  ;;  %v1618_v25 = vsel %vm1589_vm2, %v1585_v1, %v3041_v28  ;;  %v1629_v5 = vsel %vm1622_vm3, %v1596_v27, %v3135_v51  ;;  %v2236_v28 = vld [vmem:[%s2355_s20 + $0x19a] sm:$0xff]  ;;  %v4158_v51 = vld [vmem:[#allocation16_spill] sm:$0xff] }
 0x1cb   : > { %1231 = vrot.lane.b32.xlu0 %v2172_v23, %s2312_s26  ;;  %v1533_v38 = vsel %vm1523_vm0, %v4159_v0, %v4158_v51  ;;  %v4167_v0 = vld [vmem:[#allocation54_spill] sm:$0xff] }
 0x1cc   : > { %v1056_v45 = vpop.permute.xlu2 %1055  ;;  %v972_v53 = vpop.permute.xlu1 %971  ;;  %v1566_v39 = vsel %vm1556_vm1, %v1533_v38, %v4160_v54 }
 0x1cd   : > { %v3287_v3 = vsel %vm1655_vm4, %v1629_v5, %v1056_v45  ;;  %v3290_v17 = vsel %vm1622_vm3, %v1618_v25, %v972_v53  ;;  %v970_v23 = vpop.permute.xlu0 %969  ;;  %v1599_v22 = vsel %vm1589_vm2, %v1566_v39, %v3007_v20  ;;  %v2187_v5 = vld [vmem:[%s2355_s20 + $0xc9] sm:$0xff]  ;;  %v4162_v53 = vld [vmem:[#allocation6_spill] sm:$0xff] }
 0x1ce   : > { %v3293_v61 = vsel %vm1622_vm3, %v1617_v42, %v970_v23  ;;  %v1632_v6 = vsel %vm1622_vm3, %v1599_v22, %v3147_v41  ;;  %v2155_v45 = vld [vmem:[%s2355_s20 + $0xc8] sm:$0xff]  ;;  %v4166_v41 = vld [vmem:[#allocation53_spill] sm:$0xff] }
 0x1cf   : > { %v4163_v42 = vld [vmem:[#allocation31_spill] sm:$0xff] }
 0x1d0   : > { %v1526_v23 = vsel %vm1523_vm0, %v4163_v42, %v4162_v53  ;;  %v4164_v20 = vld [vmem:[#allocation19_spill] sm:$0xff] }
 0x1d1   : > { %v1559_v38 = vsel %vm1556_vm1, %v1526_v23, %v4167_v0  ;;  %v2219_v53 = vld [vmem:[%s2355_s20 + $0xca] sm:$0xff] }
 0x1d2   : > { %1101 = vrot.lane.b32.xlu2 %v4161_v8, %s2311_s25  ;;  %1487 = vrot.lane.b32.xlu1 %v2236_v28, %s2313_s27  ;;  %v4165_v28 = vld [vmem:[#allocation45_spill] sm:$0xff]  ;;  %v1592_v54 = vsel %vm1589_vm2, %v1559_v38, %v2985_v9  ;;  %v4169_v23 = vld [vmem:[#allocation12_spill] sm:$0xff] }
 0x1d3   : > { %1455 = vrot.lane.b32.xlu0 %v2220_v21, %s2313_s27  ;;  %v1536_v21 = vsel %vm1523_vm0, %v4165_v28, %v4164_v20  ;;  %v1625_v8 = vsel %vm1622_vm3, %v1592_v54, %v3071_v34  ;;  %v4170_v20 = vld [vmem:[#allocation41_spill] sm:$0xff]  ;;  %v4175_v38 = vld [vmem:[#allocation24_spill] sm:$0xff] }
 0x1d4   : > { %v1062_v1 = vpop.permute.xlu2 %1061  ;;  %v3310_v27 = vpop.permute.xlu1 %977  ;;  %v1569_v51 = vsel %vm1556_vm1, %v1536_v21, %v4166_v41  ;;  %v4171_v28 = vld [vmem:[#allocation65_spill] sm:$0xff]  ;;  %v4173_v41 = vld [vmem:[#allocation58_spill] sm:$0xff] }
 0x1d5   : > { %v3313_v44 = vsel %vm1655_vm4, %v1632_v6, %v1062_v1  ;;  %v3315_v25 = vpop.permute.xlu0 %975  ;;  %v1602_v39 = vsel %vm1589_vm2, %v1569_v51, %v3019_v18  ;;  %v4174_v51 = vld [vmem:[#allocation67_spill] sm:$0xff] }
 0x1d6   : > { %v1635_v22 = vsel %vm1622_vm3, %v1602_v39, %v3159_v63 }
 0x1da   : > { %1325 = vrot.lane.b32.xlu2 %v2187_v5, %s2314_s28  ;;  %1229 = vrot.lane.b32.xlu1 %v2907_v48, %s2312_s26 }
 0x1db   : > { %1197 = vrot.lane.b32.xlu0 %v2155_v45, %s2312_s26  ;;  %v4168_v45 = vld [vmem:[#allocation29_spill] sm:$0xff] }
 0x1dc   : > { %v1068_v6 = vpop.permute.xlu2 %1067  ;;  %v1048_v1 = vpop.permute.xlu1 %1047  ;;  %v1542_v42 = vsel %vm1523_vm0, %v4148_v52, %v4168_v45  ;;  %v2218_v45 = vld [vmem:[%s2355_s20 + $0xc2] sm:$0xff] }
 0x1dd   : > { %v3342_v5 = vsel %vm1655_vm4, %v1635_v22, %v1068_v6  ;;  %v3345_v48 = vsel %vm1655_vm4, %v1625_v8, %v1048_v1  ;;  %v3347_v9 = vpop.permute.xlu0 %1045  ;;  %v1575_v21 = vsel %vm1556_vm1, %v1542_v42, %v4171_v28  ;;  %v2186_v42 = vld [vmem:[%s2355_s20 + $0xc1] sm:$0xff] }
 0x1de   : > { %v1608_v52 = vsel %vm1589_vm2, %v1575_v21, %v3043_v29 }
 0x1df   : > { %v1641_v39 = vsel %vm1622_vm3, %v1608_v52, %v3186_v46  ;;  %v2153_v52 = vld [vmem:[%s2355_s20 + $0xb0] sm:$0xff] }
 0x1e2   : > { %1485 = vrot.lane.b32.xlu2 %v3175_v15, %s2313_s27  ;;  %1453 = vrot.lane.b32.xlu1 %v2219_v53, %s2313_s27  ;;  %v1531_v15 = vsel %vm1523_vm0, %v4170_v20, %v4169_v23  ;;  %v4177_v23 = vld [vmem:[#allocation46_spill] sm:$0xff] }
 0x1e3   : > { %1357 = vrot.lane.b32.xlu0 %v3048_v11, %s2314_s28  ;;  %v4172_v11 = vld [vmem:[#allocation84_spill] sm:$0xff]  ;;  %v1564_v0 = vsel %vm1556_vm1, %v1531_v15, %v4174_v51 }
 0x1e4   : > { %v3355_v18 = vpop.permute.xlu2 %1073  ;;  %v3357_v34 = vpop.permute.xlu1 %1053  ;;  %v1597_v54 = vsel %vm1589_vm2, %v1564_v0, %v2957_v7  ;;  %v4176_v7 = vld [vmem:[#allocation15_spill] sm:$0xff] }
 0x1e5   : > { %v3359_v63 = vpop.permute.xlu0 %1051  ;;  %v1630_v6 = vsel %vm1622_vm3, %v1597_v54, %v3133_v59  ;;  %v1534_v46 = vsel %vm1523_vm0, %v4177_v23, %v4176_v7  ;;  %v4178_v59 = vld [vmem:[#allocation73_spill] sm:$0xff] }
 0x1e6   : > { %v1567_v20 = vsel %vm1556_vm1, %v1534_v46, %v4178_v59  ;;  %v2217_v46 = vld [vmem:[%s2355_s20 + $0xb2] sm:$0xff] }
 0x1e7   : > { %v1600_v15 = vsel %vm1589_vm2, %v1567_v20, %v2969_v10  ;;  %v4180_v10 = vld [vmem:[#allocation52_spill] sm:$0xff]  ;;  %v4183_v20 = vld [vmem:[#allocation11_spill] sm:$0xff] }
 0x1e8   : > { %v2201_v59 = vld [vmem:[%s2355_s20 + $0x171] sm:$0xff] }
 0x1ea   : > { %1227 = vrot.lane.b32.xlu2 %v4172_v11, %s2312_s26  ;;  %1195 = vrot.lane.b32.xlu1 %v4173_v41, %s2312_s26  ;;  %v1633_v11 = vsel %vm1622_vm3, %v1600_v15, %v3145_v57  ;;  %v4182_v57 = vld [vmem:[#allocation79_spill] sm:$0xff]  ;;  %v4184_v15 = vld [vmem:[#allocation56_spill] sm:$0xff] }
 0x1eb   : > { %1099 = vrot.lane.b32.xlu0 %v4175_v38, %s2311_s25  ;;  %v4179_v38 = vld [vmem:[#allocation18_spill] sm:$0xff] }
 0x1ec   : > { %v1080_v8 = vpop.permute.xlu2 %1079  ;;  %v3383_v22 = vpop.permute.xlu1 %1059  ;;  %v1537_v54 = vsel %vm1523_vm0, %v4180_v10, %v4179_v38 }
 0x1ed   : > { %v3388_v1 = vsel %vm1655_vm4, %v1641_v39, %v1080_v8  ;;  %v1058_v53 = vpop.permute.xlu0 %1057  ;;  %v4181_v39 = vld [vmem:[#allocation85_spill] sm:$0xff] }
 0x1ee   : > { %v3391_v29 = vsel %vm1655_vm4, %v1630_v6, %v1058_v53 }
 0x1f2   : > { %1451 = vrot.lane.b32.xlu2 %v2218_v45, %s2313_s27  ;;  %1355 = vrot.lane.b32.xlu1 %v3051_v55, %s2314_s28 }
 0x1f3   : > { %1323 = vrot.lane.b32.xlu0 %v2186_v42, %s2314_s28 }
 0x1f4   : > { %v1086_v28 = vpop.permute.xlu2 %1085  ;;  %v3406_v21 = vpop.permute.xlu1 %1065 }
 0x1f5   : > { %v3412_v51 = vsel %vm1655_vm4, %v3214_v62, %v1086_v28  ;;  %v1064_v55 = vpop.permute.xlu0 %1063  ;;  %v1570_v62 = vsel %vm1556_vm1, %v1537_v54, %v4182_v57  ;;  %v4185_v28 = vld [vmem:[#allocation22_spill] sm:$0xff] }
 0x1f6   : > { %v3415_v0 = vsel %vm1655_vm4, %v1633_v11, %v1064_v55  ;;  %v1603_v8 = vsel %vm1589_vm2, %v1570_v62, %v2981_v13  ;;  %v1541_v13 = vsel %vm1523_vm0, %v4184_v15, %v4183_v20  ;;  %v1540_v11 = vsel %vm1523_vm0, %v4173_v41, %v4185_v28  ;;  %v4187_v55 = vld [vmem:[#allocation83_spill] sm:$0xff]  ;;  %v4191_v20 = vld [vmem:[#allocation81_spill] sm:$0xff] }
 0x1f7   : > { %v1636_v45 = vsel %vm1622_vm3, %v1603_v8, %v3157_v40  ;;  %v4186_v40 = vld [vmem:[#allocation82_spill] sm:$0xff] }
 0x1fa   : > { %1225 = vrot.lane.b32.xlu2 %v4181_v39, %s2312_s26  ;;  %1193 = vrot.lane.b32.xlu1 %v2153_v52, %s2312_s26  ;;  %v1573_v52 = vsel %vm1556_vm1, %v1540_v11, %v4187_v55  ;;  %v2216_v55 = vld [vmem:[%s2355_s20 + $0xaa] sm:$0xff] }
 0x1fb   : > { %1483 = vrot.lane.b32.xlu0 %v3217_v37, %s2313_s27  ;;  %v2185_v37 = vld [vmem:[%s2355_s20 + $0xb1] sm:$0xff]  ;;  %v1606_v41 = vsel %vm1589_vm2, %v1573_v52, %v2993_v16  ;;  %v2152_v16 = vld [vmem:[%s2355_s20 + $0xa8] sm:$0xff] }
 0x1fc   : > { %v1092_v6 = vpop.permute.xlu2 %1091  ;;  %v3430_v53 = vpop.permute.xlu1 %1071  ;;  %v1639_v62 = vsel %vm1622_vm3, %v1606_v41, %v3169_v56  ;;  %v2184_v52 = vld [vmem:[%s2355_s20 + $0xa9] sm:$0xff] }
 0x1fd   : > { %v3436_v42 = vsel %vm1655_vm4, %v3255_v43, %v1092_v6  ;;  %v1070_v7 = vpop.permute.xlu0 %1069  ;;  %v1574_v43 = vsel %vm1556_vm1, %v1541_v13, %v4186_v40 }
 0x1fe   : > { %v3439_v23 = vsel %vm1655_vm4, %v1636_v45, %v1070_v7  ;;  %v1607_v38 = vsel %vm1589_vm2, %v1574_v43, %v3045_v24  ;;  %v2233_v7 = vld [vmem:[%s2355_s20 + $0x172] sm:$0xff] }
 0x1ff   : > { %v1640_v10 = vsel %vm1622_vm3, %v1607_v38, %v3131_v58  ;;  %v4189_v58 = vld [vmem:[#allocation62_spill] sm:$0xff]  ;;  %v4193_v38 = vld [vmem:[#allocation68_spill] sm:$0xff] }
 0x202   : > { %1449 = vrot.lane.b32.xlu2 %v2217_v46, %s2313_s27  ;;  %1353 = vrot.lane.b32.xlu1 %v2201_v59, %s2314_s28  ;;  %v4188_v46 = vld [vmem:[#allocation14_spill] sm:$0xff] }
 0x203   : > { %1321 = vrot.lane.b32.xlu0 %v2185_v37, %s2314_s28  ;;  %v1544_v59 = vsel %vm1523_vm0, %v4189_v58, %v4188_v46  ;;  %v4190_v37 = vld [vmem:[#allocation28_spill] sm:$0xff]  ;;  %v2151_v46 = vld [vmem:[%s2355_s20 + $0x98] sm:$0xff] }
 0x204   : > { %v1098_v54 = vpop.permute.xlu2 %1097  ;;  %v1078_v57 = vpop.permute.xlu1 %1077  ;;  %v1543_v56 = vsel %vm1523_vm0, %v4135_v47, %v4190_v37  ;;  %v4194_v58 = vld [vmem:[#allocation21_spill] sm:$0xff] }
 0x205   : > { %v3467_v8 = vsel %vm1655_vm4, %v3293_v61, %v1098_v54  ;;  %v3470_v6 = vsel %vm1655_vm4, %v1640_v10, %v1078_v57  ;;  %v1076_v24 = vpop.permute.xlu0 %1075  ;;  %v1577_v61 = vsel %vm1556_vm1, %v1544_v59, %v2923_v30  ;;  %v1576_v15 = vsel %vm1556_vm1, %v1543_v56, %v2925_v50  ;;  %v4195_v59 = vld [vmem:[#allocation74_spill] sm:$0xff] }
 0x206   : > { %v3473_v45 = vsel %vm1655_vm4, %v1639_v62, %v1076_v24  ;;  %v1610_v13 = vsel %vm1589_vm2, %v1577_v61, %v3063_v32  ;;  %v1609_v47 = vsel %vm1589_vm2, %v1576_v15, %v3005_v19  ;;  %v2200_v19 = vld [vmem:[%s2355_s20 + $0x169] sm:$0xff] }
 0x207   : > { %v1643_v30 = vsel %vm1622_vm3, %v1610_v13, %v3143_v2  ;;  %v1642_v40 = vsel %vm1622_vm3, %v1609_v47, %v3184_v60  ;;  %v4192_v2 = vld [vmem:[#allocation17_spill] sm:$0xff] }
 0x208   : > { %v1547_v41 = vsel %vm1523_vm0, %v4193_v38, %v4192_v2  ;;  %v4197_v2 = vld [vmem:[#allocation51_spill] sm:$0xff]  ;;  %v2231_v38 = vld [vmem:[%s2355_s20 + $0x15a] sm:$0xff] }
 0x209   : > { %v1580_v60 = vsel %vm1556_vm1, %v1547_v41, %v2935_v49  ;;  %v4198_v41 = vld [vmem:[#allocation59_spill] sm:$0xff] }
 0x20a   : > { %1223 = vrot.lane.b32.xlu2 %v4191_v20, %s2312_s26  ;;  %1191 = vrot.lane.b32.xlu1 %v2152_v16, %s2312_s26  ;;  %v1613_v10 = vsel %vm1589_vm2, %v1580_v60, %v3075_v12  ;;  %v2232_v12 = vld [vmem:[%s2355_s20 + $0x16a] sm:$0xff] }
 0x20b   : > { %1481 = vrot.lane.b32.xlu0 %v2233_v7, %s2313_s27  ;;  %v1646_v54 = vsel %vm1622_vm3, %v1613_v10, %v3155_v36  ;;  %v2167_v7 = vld [vmem:[%s2355_s20 + $0x158] sm:$0xff]  ;;  %v1550_v36 = vsel %vm1523_vm0, %v4195_v59, %v4194_v58  ;;  %v4199_v10 = vld [vmem:[#allocation95_spill] sm:$0xff]  ;;  %v4201_v58 = vld [vmem:[#allocation48_spill] sm:$0xff] }
 0x20c   : > { %v3497_v28 = vpop.permute.xlu2 %1233  ;;  %v1084_v11 = vpop.permute.xlu1 %1083  ;;  %v1583_v37 = vsel %vm1556_vm1, %v1550_v36, %v2947_v4  ;;  %v1555_v59 = vsel %vm1523_vm0, %v4181_v39, %v4201_v58 }
 0x20d   : > { %v3502_v43 = vsel %vm1655_vm4, %v1643_v30, %v1084_v11  ;;  %v1082_v50 = vpop.permute.xlu0 %1081  ;;  %v2199_v30 = vld [vmem:[%s2355_s20 + $0x159] sm:$0xff] }
 0x20e   : > { %v3505_v32 = vsel %vm1655_vm4, %v1642_v40, %v1082_v50  ;;  %v2183_v11 = vld [vmem:[%s2355_s20 + $0x99] sm:$0xff] }
 0x212   : > { %1447 = vrot.lane.b32.xlu2 %v2216_v55, %s2313_s27  ;;  %1351 = vrot.lane.b32.xlu1 %v2200_v19, %s2314_s28  ;;  %v2166_v55 = vld [vmem:[%s2355_s20 + $0x150] sm:$0xff] }
 0x213   : > { %1319 = vrot.lane.b32.xlu0 %v2184_v52, %s2314_s28  ;;  %v2150_v19 = vld [vmem:[%s2355_s20 + $0x90] sm:$0xff]  ;;  %v4196_v52 = vld [vmem:[#allocation23_spill] sm:$0xff] }
 0x214   : > { %v1458_v57 = vpop.permute.xlu2 %1457  ;;  %v1090_v62 = vpop.permute.xlu1 %1089 }
 0x215   : > { %v3523_v24 = vsel %vm1655_vm4, %v1646_v54, %v1090_v62  ;;  %v1088_v16 = vpop.permute.xlu0 %1087  ;;  %v4200_v62 = vld [vmem:[#allocation25_spill] sm:$0xff] }
 0x216   : > { %v3527_v49 = vsel %vm1655_vm4, %v3211_v26, %v1088_v16  ;;  %v1616_v26 = vsel %vm1589_vm2, %v1583_v37, %v3087_v33  ;;  %v2215_v33 = vld [vmem:[%s2355_s20 + $0x9a] sm:$0xff] }
 0x217   : > { %v1649_v56 = vsel %vm1622_vm3, %v1616_v26, %v3167_v35  ;;  %v4202_v26 = vld [vmem:[#allocation91_spill] sm:$0xff] }
 0x21a   : > { %1221 = vrot.lane.b32.xlu2 %v2167_v7, %s2312_s26  ;;  %1189 = vrot.lane.b32.xlu1 %v2151_v46, %s2312_s26 }
 0x21b   : > { %1479 = vrot.lane.b32.xlu0 %v2232_v12, %s2313_s27 }
 0x21c   : > { %v3544_v61 = vpop.permute.xlu2 %1199  ;;  %v1096_v15 = vpop.permute.xlu1 %1095 }
 0x21d   : > { %v3547_v4 = vsel %vm1655_vm4, %v1649_v56, %v1096_v15  ;;  %v1094_v13 = vpop.permute.xlu0 %1093  ;;  %v1588_v56 = vsel %vm1556_vm1, %v1555_v59, %v4202_v26  ;;  %v4207_v59 = vld [vmem:[#allocation8_spill] sm:$0xff] }
 0x21e   : > { %v3551_v47 = vsel %vm1655_vm4, %v3252_v14, %v1094_v13  ;;  %v1539_v14 = vsel %vm1523_vm0, %v4197_v2, %v4196_v52 }
 0x21f   : > { %v1572_v60 = vsel %vm1556_vm1, %v1539_v14, %v4198_v41  ;;  %v2230_v41 = vld [vmem:[%s2355_s20 + $0x152] sm:$0xff] }
 0x220   : > { %v1605_v54 = vsel %vm1589_vm2, %v1572_v60, %v4199_v10 }
 0x221   : > { %v1638_v16 = vsel %vm1622_vm3, %v1605_v54, %v4200_v62  ;;  %v4205_v62 = vld [vmem:[#allocation86_spill] sm:$0xff] }
 0x222   : > { %1445 = vrot.lane.b32.xlu2 %v2215_v33, %s2313_s27  ;;  %1349 = vrot.lane.b32.xlu1 %v2199_v30, %s2314_s28  ;;  %v1671_v7 = vsel %vm1655_vm4, %v1638_v16, %v3355_v18  ;;  %v4203_v18 = vld [vmem:[#allocation97_spill] sm:$0xff] }
 0x223   : > { %1317 = vrot.lane.b32.xlu0 %v2183_v11, %s2314_s28  ;;  %v1621_v13 = vsel %vm1589_vm2, %v1588_v56, %v4203_v18  ;;  %v2214_v30 = vld [vmem:[%s2355_s20 + $0x92] sm:$0xff]  ;;  %v2213_v56 = vld [vmem:[%s2355_s20 + $0x82] sm:$0xff] }
 0x224   : > { %v3559_v35 = vpop.permute.xlu2 %1359  ;;  %v1202_v40 = vpop.permute.xlu1 %1201  ;;  %v2198_v11 = vld [vmem:[%s2355_s20 + $0x151] sm:$0xff]  ;;  %v1654_v39 = vsel %vm1622_vm3, %v1621_v13, %v3310_v27  ;;  %v4209_v18 = vld [vmem:[#allocation78_spill] sm:$0xff] }
 0x225   : > { %v1106_v50 = vpop.permute.xlu0 %1105  ;;  %v1704_v36 = vsel %vm1688_vm6, %v1671_v7, %v1202_v40  ;;  %v2182_v40 = vld [vmem:[%s2355_s20 + $0x91] sm:$0xff] }
 0x22a   : > { %1219 = vrot.lane.b32.xlu2 %v2166_v55, %s2312_s26  ;;  %1187 = vrot.lane.b32.xlu1 %v2150_v19, %s2312_s26  ;;  %v1687_v55 = vsel %vm1655_vm4, %v1654_v39, %v1106_v50  ;;  %v2165_v50 = vld [vmem:[%s2355_s20 + $0x140] sm:$0xff] }
 0x22b   : > { %1477 = vrot.lane.b32.xlu0 %v2231_v38, %s2313_s27  ;;  %v2149_v38 = vld [vmem:[%s2355_s20 + $0x80] sm:$0xff] }
 0x22c   : > { %v3578_v46 = vpop.permute.xlu2 %1101  ;;  %v1362_v12 = vpop.permute.xlu1 %1361 }
 0x22d   : > { %v1330_v37 = vpop.permute.xlu0 %1329 }
 0x22e   : > { %v1737_v15 = vsel %vm1721_vm5, %v1704_v36, %v1330_v37  ;;  %v4208_v36 = vld [vmem:[#allocation50_spill] sm:$0xff] }
 0x22f   : > { %v1770_v33 = vsel %vm1754_vm7, %v1737_v15, %v1458_v57  ;;  %v1720_v57 = vsel %vm1688_vm6, %v1687_v55, %v3497_v28  ;;  %v4204_v28 = vld [vmem:[#allocation49_spill] sm:$0xff]  ;;  %v1538_v37 = vsel %vm1523_vm0, %v4208_v36, %v4207_v59  ;;  %v2197_v15 = vld [vmem:[%s2355_s20 + $0x141] sm:$0xff] }
 0x230   : > { %2238 = vmatpush.xpose.msk.msra.mxu0 %vm1794_vm8, %v1770_v33  ;;  %v1753_v27 = vsel %vm1721_vm5, %v1720_v57, %v1362_v12  ;;  %v1554_v60 = vsel %vm1523_vm0, %v4191_v20, %v4204_v28  ;;  %v4206_v12 = vld [vmem:[#allocation100_spill] sm:$0xff]  ;;  %v1571_v20 = vsel %vm1556_vm1, %v1538_v37, %v4209_v18  ;;  %v2181_v33 = vld [vmem:[%s2355_s20 + $0x81] sm:$0xff]  ;;  %v2180_v59 = vld [vmem:[%s2355_s20 + $0x79] sm:$0xff] }
 0x231   : > { %v1587_v16 = vsel %vm1556_vm1, %v1554_v60, %v4205_v62  ;;  %v2229_v28 = vld [vmem:[%s2355_s20 + $0x142] sm:$0xff]  ;;  %v2212_v62 = vld [vmem:[%s2355_s20 + $0x7a] sm:$0xff] }
 0x232   : > { %1443 = vrot.lane.b32.xlu2 %v2214_v30, %s2313_s27  ;;  %1347 = vrot.lane.b32.xlu1 %v2198_v11, %s2314_s28  ;;  %v1620_v58 = vsel %vm1589_vm2, %v1587_v16, %v4206_v12  ;;  %v4210_v30 = vld [vmem:[#allocation96_spill] sm:$0xff]  ;;  %v2196_v16 = vld [vmem:[%s2355_s20 + $0x139] sm:$0xff] }
 0x233   : > { %1315 = vrot.lane.b32.xlu0 %v2182_v40, %s2314_s28  ;;  %v1653_v26 = vsel %vm1622_vm3, %v1620_v58, %v3315_v25  ;;  %v1604_v11 = vsel %vm1589_vm2, %v1571_v20, %v4210_v30  ;;  %v4211_v40 = vld [vmem:[#allocation105_spill] sm:$0xff]  ;;  %v4213_v12 = vld [vmem:[#allocation80_spill] sm:$0xff]  ;;  %v4216_v18 = vld [vmem:[#allocation26_spill] sm:$0xff] }
 0x234   : > { %v3602_v19 = vpop.permute.xlu2 %1325  ;;  %v1104_v52 = vpop.permute.xlu1 %1103  ;;  %v1637_v55 = vsel %vm1622_vm3, %v1604_v11, %v4211_v40  ;;  %v4214_v36 = vld [vmem:[#allocation89_spill] sm:$0xff] }
 0x235   : > { %v1490_v2 = vpop.permute.xlu0 %1489  ;;  %v1686_v13 = vsel %vm1655_vm4, %v1653_v26, %v1104_v52  ;;  %v1670_v25 = vsel %vm1655_vm4, %v1637_v55, %v3430_v53 }
 0x236   : > { %v1786_v14 = vsel %vm1754_vm7, %v1753_v27, %v1490_v2  ;;  %v1703_v57 = vsel %vm1688_vm6, %v1670_v25, %v3544_v61  ;;  %v2164_v61 = vld [vmem:[%s2355_s20 + $0x138] sm:$0xff]  ;;  %v2163_v25 = vld [vmem:[%s2355_s20 + $0x128] sm:$0xff] }
 0x237   : > { %2255 = vmatpush.xpose.msk.msra.mxu1 %vm1794_vm8, %v1786_v14 }
 0x23a   : > { %1217 = vrot.lane.b32.xlu2 %v2165_v50, %s2312_s26  ;;  %1185 = vrot.lane.b32.xlu1 %v2149_v38, %s2312_s26 }
 0x23b   : > { %1475 = vrot.lane.b32.xlu0 %v2230_v41, %s2313_s27  ;;  %v2148_v41 = vld [vmem:[%s2355_s20 + $0x78] sm:$0xff] }
 0x23c   : > { %v1486_v10 = vpop.permute.xlu2 %1485  ;;  %v1328_v54 = vpop.permute.xlu1 %1327 }
 0x23d   : > { %v1232_v7 = vpop.permute.xlu0 %1231  ;;  %v1736_v14 = vsel %vm1721_vm5, %v1703_v57, %v1328_v54  ;;  %v2147_v57 = vld [vmem:[%s2355_s20 + $0x68] sm:$0xff] }
 0x23e   : > { %v1719_v39 = vsel %vm1688_vm6, %v1686_v13, %v1232_v7  ;;  %v4212_v7 = vld [vmem:[#allocation27_spill] sm:$0xff] }
 0x23f   : > { %v1752_v2 = vsel %vm1721_vm5, %v1719_v39, %v3559_v35  ;;  %v1553_v58 = vsel %vm1523_vm0, %v4213_v12, %v4212_v7  ;;  %v2227_v7 = vld [vmem:[%s2355_s20 + $0x12a] sm:$0xff] }
 0x240   : > { %v1586_v37 = vsel %vm1556_vm1, %v1553_v58, %v4214_v36 }
 0x242   : > { %1441 = vrot.lane.b32.xlu2 %v2213_v56, %s2313_s27  ;;  %1345 = vrot.lane.b32.xlu1 %v2197_v15, %s2314_s28  ;;  %v4215_v56 = vld [vmem:[#allocation101_spill] sm:$0xff] }
 0x243   : > { %1313 = vrot.lane.b32.xlu0 %v2181_v33, %s2314_s28  ;;  %v1619_v15 = vsel %vm1589_vm2, %v1586_v37, %v4215_v56  ;;  %v2295_v56 = vld [vmem:[%s2355_s20 + $0x80] sm:$0xff] }
 0x244   : > { %v3643_v52 = vpop.permute.xlu2 %1227  ;;  %v1488_v27 = vpop.permute.xlu1 %1487  ;;  %v1652_v20 = vsel %vm1622_vm3, %v1619_v15, %v4216_v18  ;;  %v4217_v15 = vld [vmem:[#allocation5_spill] sm:$0xff] }
 0x245   : > { %v1456_v50 = vpop.permute.xlu0 %1455  ;;  %v1785_v38 = vsel %vm1754_vm7, %v1752_v2, %v1488_v27  ;;  %v1685_v13 = vsel %vm1655_vm4, %v1652_v20, %v3578_v46  ;;  %v2228_v27 = vld [vmem:[%s2355_s20 + $0x13a] sm:$0xff]  ;;  %v1535_v18 = vsel %vm1523_vm0, %v2295_v56, %v4217_v15  ;;  %v2208_v15 = vld [vmem:[%s2355_s20 + $0x4a] sm:$0xff] }
 0x246   : > { %v1769_v53 = vsel %vm1754_vm7, %v1736_v14, %v1456_v50  ;;  %2256 = vmatpush.xpose.msk.msra.mxu1 %vm1794_vm8, %v1785_v38  ;;  %v2211_v50 = vld [vmem:[%s2355_s20 + $0x6a] sm:$0xff]  ;;  %v2178_v20 = vld [vmem:[%s2355_s20 + $0x61] sm:$0xff] }
 0x247   : > { %2239 = vmatpush.xpose.msk.msra.mxu0 %vm1794_vm8, %v1769_v53  ;;  %v2195_v38 = vld [vmem:[%s2355_s20 + $0x129] sm:$0xff] }
 0x24a   : > { %1215 = vrot.lane.b32.xlu2 %v2164_v61, %s2312_s26  ;;  %1183 = vrot.lane.b32.xlu1 %v2148_v41, %s2312_s26 }
 0x24b   : > { %1473 = vrot.lane.b32.xlu0 %v2229_v28, %s2313_s27 }
 0x24c   : > { %v1452_v35 = vpop.permute.xlu2 %1451  ;;  %v1230_v60 = vpop.permute.xlu1 %1229 }
 0x24d   : > { %v1198_v54 = vpop.permute.xlu0 %1197  ;;  %v1718_v11 = vsel %vm1688_vm6, %v1685_v13, %v1230_v60  ;;  %v4218_v13 = vld [vmem:[#allocation72_spill] sm:$0xff] }
 0x24e   : > { %v1702_v26 = vsel %vm1688_vm6, %v3439_v23, %v1198_v54 }
 0x24f   : > { %v1735_v30 = vsel %vm1721_vm5, %v1702_v26, %v3602_v19  ;;  %v2210_v26 = vld [vmem:[%s2355_s20 + $0x62] sm:$0xff] }
 0x252   : > { %1439 = vrot.lane.b32.xlu2 %v2212_v62, %s2313_s27  ;;  %1343 = vrot.lane.b32.xlu1 %v2196_v16, %s2314_s28  ;;  %v2162_v62 = vld [vmem:[%s2355_s20 + $0x120] sm:$0xff] }
 0x253   : > { %1311 = vrot.lane.b32.xlu0 %v2180_v59, %s2314_s28  ;;  %v2146_v16 = vld [vmem:[%s2355_s20 + $0x60] sm:$0xff] }
 0x254   : > { %v3677_v33 = vpop.permute.xlu2 %1225  ;;  %v1454_v23 = vpop.permute.xlu1 %1453 }
 0x255   : > { %v1358_v39 = vpop.permute.xlu0 %1357  ;;  %v1768_v40 = vsel %vm1754_vm7, %v1735_v30, %v1454_v23  ;;  %v4219_v23 = vld [vmem:[#allocation94_spill] sm:$0xff] }
 0x256   : > { %v1751_v55 = vsel %vm1721_vm5, %v1718_v11, %v1358_v39  ;;  %2240 = vmatpush.xpose.msk.msra.mxu0 %vm1794_vm8, %v1768_v40  ;;  %v4220_v11 = vld [vmem:[#allocation102_spill] sm:$0xff] }
 0x257   : > { %v1784_v46 = vsel %vm1754_vm7, %v1751_v55, %v1486_v10  ;;  %v2179_v10 = vld [vmem:[%s2355_s20 + $0x69] sm:$0xff] }
 0x258   : > { %2257 = vmatpush.xpose.msk.msra.mxu1 %vm1794_vm8, %v1784_v46 }
 0x25a   : > { %1213 = vrot.lane.b32.xlu2 %v2163_v25, %s2312_s26  ;;  %1181 = vrot.lane.b32.xlu1 %v2147_v57, %s2312_s26 }
 0x25b   : > { %1471 = vrot.lane.b32.xlu0 %v2228_v27, %s2313_s27 }
 0x25c   : > { %v1450_v19 = vpop.permute.xlu2 %1449  ;;  %v1196_v2 = vpop.permute.xlu1 %1195 }
 0x25d   : > { %v1100_v14 = vpop.permute.xlu0 %1099  ;;  %v1701_v41 = vsel %vm1688_vm6, %v3342_v5, %v1196_v2 }
 0x25e   : > { %v1684_v12 = vsel %vm1655_vm4, %v3290_v17, %v1100_v14  ;;  %v2194_v17 = vld [vmem:[%s2355_s20 + $0x121] sm:$0xff]  ;;  %v2161_v14 = vld [vmem:[%s2355_s20 + $0x110] sm:$0xff] }
 0x25f   : > { %v1717_v5 = vsel %vm1688_vm6, %v1684_v12, %v3643_v52  ;;  %v1568_v52 = vsel %vm1556_vm1, %v1535_v18, %v4218_v13  ;;  %v2192_v18 = vld [vmem:[%s2355_s20 + $0x109] sm:$0xff] }
 0x260   : > { %v1601_v30 = vsel %vm1589_vm2, %v1568_v52, %v4219_v23 }
 0x261   : > { %v1634_v39 = vsel %vm1622_vm3, %v1601_v30, %v4220_v11  ;;  %v2159_v11 = vld [vmem:[%s2355_s20 + $0xf8] sm:$0xff] }
 0x262   : > { %1437 = vrot.lane.b32.xlu2 %v2211_v50, %s2313_s27  ;;  %1341 = vrot.lane.b32.xlu1 %v2195_v38, %s2314_s28  ;;  %v1667_v40 = vsel %vm1655_vm4, %v1634_v39, %v3406_v21  ;;  %v2145_v50 = vld [vmem:[%s2355_s20 + $0x50] sm:$0xff]  ;;  %v2226_v38 = vld [vmem:[%s2355_s20 + $0x122] sm:$0xff]  ;;  %v1716_v21 = vsel %vm1688_vm6, %v3467_v8, %v3677_v33 }
 0x263   : > { %1309 = vrot.lane.b32.xlu0 %v2179_v10, %s2314_s28  ;;  %v2143_v39 = vld [vmem:[%s2355_s20 + $0x38] sm:$0xff] }
 0x264   : > { %v3699_v53 = vpop.permute.xlu2 %1223  ;;  %v1356_v61 = vpop.permute.xlu1 %1355 }
 0x265   : > { %v1324_v28 = vpop.permute.xlu0 %1323  ;;  %v1750_v59 = vsel %vm1721_vm5, %v1717_v5, %v1356_v61 }
 0x266   : > { %v1734_v60 = vsel %vm1721_vm5, %v1701_v41, %v1324_v28 }
 0x267   : > { %v1767_v54 = vsel %vm1754_vm7, %v1734_v60, %v1452_v35  ;;  %v2209_v60 = vld [vmem:[%s2355_s20 + $0x52] sm:$0xff] }
 0x268   : > { %2241 = vmatpush.xpose.msk.msra.mxu0 %vm1794_vm8, %v1767_v54  ;;  %v2193_v54 = vld [vmem:[%s2355_s20 + $0x111] sm:$0xff] }
 0x26a   : > { %1211 = vrot.lane.b32.xlu2 %v2162_v62, %s2312_s26  ;;  %1179 = vrot.lane.b32.xlu1 %v2146_v16, %s2312_s26  ;;  %v2177_v62 = vld [vmem:[%s2355_s20 + $0x51] sm:$0xff] }
 0x26b   : > { %1469 = vrot.lane.b32.xlu0 %v2227_v7, %s2313_s27 }
 0x26c   : > { %v1448_v35 = vpop.permute.xlu2 %1447  ;;  %v1194_v58 = vpop.permute.xlu1 %1193 }
 0x26d   : > { %v1484_v36 = vpop.permute.xlu0 %1483  ;;  %v1700_v25 = vsel %vm1688_vm6, %v1667_v40, %v1194_v58  ;;  %v2160_v58 = vld [vmem:[%s2355_s20 + $0x108] sm:$0xff] }
 0x26e   : > { %v1783_v37 = vsel %vm1754_vm7, %v1750_v59, %v1484_v36  ;;  %v2144_v59 = vld [vmem:[%s2355_s20 + $0x48] sm:$0xff]  ;;  %v2225_v36 = vld [vmem:[%s2355_s20 + $0x112] sm:$0xff] }
 0x26f   : > { %2258 = vmatpush.xpose.msk.msra.mxu1 %vm1794_vm8, %v1783_v37  ;;  %v2224_v40 = vld [vmem:[%s2355_s20 + $0x10a] sm:$0xff] }
 0x272   : > { %1435 = vrot.lane.b32.xlu2 %v2210_v26, %s2313_s27  ;;  %1339 = vrot.lane.b32.xlu1 %v2194_v17, %s2314_s28 }
 0x273   : > { %1307 = vrot.lane.b32.xlu0 %v2178_v20, %s2314_s28  ;;  %v2176_v20 = vld [vmem:[%s2355_s20 + $0x49] sm:$0xff] }
 0x274   : > { %v3736_v55 = vpop.permute.xlu2 %1221  ;;  %v1354_v46 = vpop.permute.xlu1 %1353 }
 0x275   : > { %v1322_v57 = vpop.permute.xlu0 %1321 }
 0x276   : > { %v1733_v27 = vsel %vm1721_vm5, %v1700_v25, %v1322_v57 }
 0x277   : > { %v1766_v2 = vsel %vm1754_vm7, %v1733_v27, %v1450_v19  ;;  %v1749_v19 = vsel %vm1721_vm5, %v1716_v21, %v1354_v46  ;;  %v4221_v21 = vld [vmem:[#allocation4_spill] sm:$0xff] }
 0x278   : > { %2242 = vmatpush.xpose.msk.msra.mxu0 %vm1794_vm8, %v1766_v2 }
 0x27a   : > { %1209 = vrot.lane.b32.xlu2 %v2161_v14, %s2312_s26  ;;  %1177 = vrot.lane.b32.xlu1 %v2145_v50, %s2312_s26  ;;  %v2207_v14 = vld [vmem:[%s2355_s20 + $0x3a] sm:$0xff] }
 0x27b   : > { %1467 = vrot.lane.b32.xlu0 %v2226_v38, %s2313_s27  ;;  %v2191_v50 = vld [vmem:[%s2355_s20 + $0xf9] sm:$0xff] }
 0x27c   : > { %v1446_v10 = vpop.permute.xlu2 %1445  ;;  %v1192_v61 = vpop.permute.xlu1 %1191  ;;  %v2296_v38 = vld [vmem:[%s2355_s20 + $0x60] sm:$0xff] }
 0x27d   : > { %v1482_v41 = vpop.permute.xlu0 %1481  ;;  %v1699_v16 = vsel %vm1688_vm6, %v3415_v0, %v1192_v61  ;;  %v1715_v0 = vsel %vm1688_vm6, %v3547_v4, %v3699_v53  ;;  %v2175_v61 = vld [vmem:[%s2355_s20 + $0x39] sm:$0xff] }
 0x27e   : > { %v1782_v28 = vsel %vm1754_vm7, %v1749_v19, %v1482_v41  ;;  %v4222_v19 = vld [vmem:[#allocation66_spill] sm:$0xff] }
 0x27f   : > { %2259 = vmatpush.xpose.msk.msra.mxu1 %vm1794_vm8, %v1782_v28  ;;  %v4224_v28 = vld [vmem:[#allocation99_spill] sm:$0xff] }
 0x282   : > { %1433 = vrot.lane.b32.xlu2 %v2209_v60, %s2313_s27  ;;  %1337 = vrot.lane.b32.xlu1 %v2193_v54, %s2314_s28 }
 0x283   : > { %1305 = vrot.lane.b32.xlu0 %v2177_v62, %s2314_s28 }
 0x284   : > { %v3760_v8 = vpop.permute.xlu2 %1219  ;;  %v1352_v33 = vpop.permute.xlu1 %1351 }
 0x285   : > { %v1320_v7 = vpop.permute.xlu0 %1319 }
 0x286   : > { %v1732_v12 = vsel %vm1721_vm5, %v1699_v16, %v1320_v7 }
 0x287   : > { %v1765_v5 = vsel %vm1754_vm7, %v1732_v12, %v1448_v35  ;;  %v1748_v35 = vsel %vm1721_vm5, %v1715_v0, %v1352_v33 }
 0x288   : > { %2243 = vmatpush.xpose.msk.msra.mxu0 %vm1794_vm8, %v1765_v5 }
 0x28a   : > { %1207 = vrot.lane.b32.xlu2 %v2160_v58, %s2312_s26  ;;  %1175 = vrot.lane.b32.xlu1 %v2144_v59, %s2312_s26  ;;  %v2158_v58 = vld [vmem:[%s2355_s20 + $0xf0] sm:$0xff] }
 0x28b   : > { %1465 = vrot.lane.b32.xlu0 %v2225_v36, %s2313_s27  ;;  %v2142_v59 = vld [vmem:[%s2355_s20 + $0x30] sm:$0xff]  ;;  %v2223_v36 = vld [vmem:[%s2355_s20 + $0xfa] sm:$0xff] }
 0x28c   : > { %v1444_v37 = vpop.permute.xlu2 %1443  ;;  %v1190_v26 = vpop.permute.xlu1 %1189 }
 0x28d   : > { %v1480_v17 = vpop.permute.xlu0 %1479  ;;  %v1698_v13 = vsel %vm1688_vm6, %v3313_v44, %v1190_v26  ;;  %v1714_v44 = vsel %vm1688_vm6, %v3551_v47, %v3736_v55  ;;  %v4223_v55 = vld [vmem:[#allocation93_spill] sm:$0xff] }
 0x28e   : > { %v1781_v56 = vsel %vm1754_vm7, %v1748_v35, %v1480_v17 }
 0x28f   : > { %2260 = vmatpush.xpose.msk.msra.mxu1 %vm1794_vm8, %v1781_v56  ;;  %v2190_v56 = vld [vmem:[%s2355_s20 + $0xf1] sm:$0xff] }
 0x292   : > { %1431 = vrot.lane.b32.xlu2 %v2208_v15, %s2313_s27  ;;  %1335 = vrot.lane.b32.xlu1 %v2192_v18, %s2314_s28  ;;  %v2206_v15 = vld [vmem:[%s2355_s20 + $0x32] sm:$0xff] }
 0x293   : > { %1303 = vrot.lane.b32.xlu0 %v2176_v20, %s2314_s28  ;;  %v2174_v18 = vld [vmem:[%s2355_s20 + $0x31] sm:$0xff] }
 0x294   : > { %v3785_v4 = vpop.permute.xlu2 %1217  ;;  %v1350_v53 = vpop.permute.xlu1 %1349 }
 0x295   : > { %v1318_v52 = vpop.permute.xlu0 %1317  ;;  %v1747_v57 = vsel %vm1721_vm5, %v1714_v44, %v1350_v53 }
 0x296   : > { %v1731_v23 = vsel %vm1721_vm5, %v1698_v13, %v1318_v52 }
 0x297   : > { %v1764_v30 = vsel %vm1754_vm7, %v1731_v23, %v1446_v10  ;;  %v1532_v10 = vsel %vm1523_vm0, %v2296_v38, %v4221_v21  ;;  %v2222_v23 = vld [vmem:[%s2355_s20 + $0xf2] sm:$0xff] }
 0x298   : > { %2244 = vmatpush.xpose.msk.msra.mxu0 %vm1794_vm8, %v1764_v30  ;;  %v1565_v47 = vsel %vm1556_vm1, %v1532_v10, %v4222_v19  ;;  %v1712_v30 = vsel %vm1688_vm6, %v3523_v24, %v3785_v4  ;;  %v4225_v10 = vld [vmem:[#allocation3_spill] sm:$0xff]  ;;  %v4226_v19 = vld [vmem:[#allocation60_spill] sm:$0xff] }
 0x299   : > { %v1598_v41 = vsel %vm1589_vm2, %v1565_v47, %v4223_v55  ;;  %v4227_v55 = vld [vmem:[#allocation92_spill] sm:$0xff] }
 0x29a   : > { %1205 = vrot.lane.b32.xlu2 %v2159_v11, %s2312_s26  ;;  %1173 = vrot.lane.b32.xlu1 %v2143_v39, %s2312_s26  ;;  %v1631_v60 = vsel %vm1622_vm3, %v1598_v41, %v4224_v28 }
 0x29b   : > { %1463 = vrot.lane.b32.xlu0 %v2224_v40, %s2313_s27  ;;  %v1664_v54 = vsel %vm1655_vm4, %v1631_v60, %v3383_v22  ;;  %v1713_v22 = vsel %vm1688_vm6, %v3436_v42, %v3760_v8 }
 0x29c   : > { %v1442_v46 = vpop.permute.xlu2 %1441  ;;  %v1188_v25 = vpop.permute.xlu1 %1187 }
 0x29d   : > { %v1478_v27 = vpop.permute.xlu0 %1477  ;;  %v1697_v16 = vsel %vm1688_vm6, %v1664_v54, %v1188_v25 }
 0x29e   : > { %v1780_v2 = vsel %vm1754_vm7, %v1747_v57, %v1478_v27 }
 0x29f   : > { %2261 = vmatpush.xpose.msk.msra.mxu1 %vm1794_vm8, %v1780_v2 }
 0x2a2   : > { %1429 = vrot.lane.b32.xlu2 %v2207_v14, %s2313_s27  ;;  %1333 = vrot.lane.b32.xlu1 %v2191_v50, %s2314_s28 }
 0x2a3   : > { %1301 = vrot.lane.b32.xlu0 %v2175_v61, %s2314_s28 }
 0x2a4   : > { %v1216_v62 = vpop.permute.xlu2 %1215  ;;  %v1348_v33 = vpop.permute.xlu1 %1347 }
 0x2a5   : > { %v1316_v7 = vpop.permute.xlu0 %1315  ;;  %v1711_v24 = vsel %vm1688_vm6, %v3527_v49, %v1216_v62  ;;  %v4228_v49 = vld [vmem:[#allocation98_spill] sm:$0xff] }
 0x2a6   : > { %v1730_v12 = vsel %vm1721_vm5, %v1697_v16, %v1316_v7 }
 0x2a7   : > { %v1763_v5 = vsel %vm1754_vm7, %v1730_v12, %v1444_v37  ;;  %v1746_v37 = vsel %vm1721_vm5, %v1713_v22, %v1348_v33  ;;  %v2298_v22 = vld [vmem:[%s2355_s20 + $0x30] sm:$0xff] }
 0x2a8   : > { %2245 = vmatpush.xpose.msk.msra.mxu0 %vm1794_vm8, %v1763_v5 }
 0x2aa   : > { %1203 = vrot.lane.b32.xlu2 %v2158_v58, %s2312_s26  ;;  %1171 = vrot.lane.b32.xlu1 %v2142_v59, %s2312_s26 }
 0x2ab   : > { %1461 = vrot.lane.b32.xlu0 %v2223_v36, %s2313_s27 }
 0x2ac   : > { %v1186_v0 = vpop.permute.xlu1 %1185  ;;  %v1440_v35 = vpop.permute.xlu2 %1439 }
 0x2ad   : > { %v1476_v26 = vpop.permute.xlu0 %1475  ;;  %v1696_v8 = vsel %vm1688_vm6, %v3391_v29, %v1186_v0  ;;  %v4229_v0 = vld [vmem:[#allocation2_spill] sm:$0xff] }
 0x2ae   : > { %v1779_v17 = vsel %vm1754_vm7, %v1746_v37, %v1476_v26  ;;  %v1528_v37 = vsel %vm1523_vm0, %v2298_v22, %v4229_v0 }
 0x2af   : > { %2262 = vmatpush.xpose.msk.msra.mxu1 %vm1794_vm8, %v1779_v17 }
 0x2b2   : > { %1331 = vrot.lane.b32.xlu1 %v2190_v56, %s2314_s28  ;;  %1427 = vrot.lane.b32.xlu2 %v2206_v15, %s2313_s27  ;;  %v4231_v56 = vld [vmem:[#allocation88_spill] sm:$0xff] }
 0x2b3   : > { %1299 = vrot.lane.b32.xlu0 %v2174_v18, %s2314_s28 }
 0x2b4   : > { %v1346_v42 = vpop.permute.xlu1 %1345  ;;  %v1214_v52 = vpop.permute.xlu2 %1213 }
 0x2b5   : > { %v1314_v20 = vpop.permute.xlu0 %1313  ;;  %v1745_v39 = vsel %vm1721_vm5, %v1712_v30, %v1346_v42  ;;  %v1710_v5 = vsel %vm1688_vm6, %v3412_v51, %v1214_v52  ;;  %v4232_v51 = vld [vmem:[#allocation106_spill] sm:$0xff] }
 0x2b6   : > { %v1729_v53 = vsel %vm1721_vm5, %v1696_v8, %v1314_v20 }
 0x2b7   : > { %v1762_v13 = vsel %vm1754_vm7, %v1729_v53, %v1442_v46 }
 0x2b8   : > { %2246 = vmatpush.xpose.msk.msra.mxu0 %vm1794_vm8, %v1762_v13 }
 0x2bb   : > { %1459 = vrot.lane.b32.xlu0 %v2222_v23, %s2313_s27 }
 0x2bc   : > { %v1184_v11 = vpop.permute.xlu1 %1183  ;;  %v1438_v44 = vpop.permute.xlu2 %1437 }
 0x2bd   : > { %v1474_v40 = vpop.permute.xlu0 %1473  ;;  %v1695_v25 = vsel %vm1688_vm6, %v3287_v3, %v1184_v11  ;;  %v2297_v3 = vld [vmem:[%s2355_s20 + $0x38] sm:$0xff] }
 0x2be   : > { %v1778_v29 = vsel %vm1754_vm7, %v1745_v39, %v1474_v40  ;;  %v1529_v61 = vsel %vm1523_vm0, %v2297_v3, %v4225_v10 }
 0x2bf   : > { %2263 = vmatpush.xpose.msk.msra.mxu1 %vm1794_vm8, %v1778_v29  ;;  %v1562_v47 = vsel %vm1556_vm1, %v1529_v61, %v4226_v19 }
 0x2c0   : > { %v1595_v41 = vsel %vm1589_vm2, %v1562_v47, %v4227_v55  ;;  %v210_v47 = vld [vmem:[%s2355_s20 + $0x8] sm:$0xff] }
 0x2c1   : > { %v1628_v28 = vsel %vm1622_vm3, %v1595_v41, %v4228_v49 }
 0x2c2   : > { %v1661_v60 = vsel %vm1655_vm4, %v1628_v28, %v3357_v34 }
 0x2c4   : > { %v1344_v46 = vpop.permute.xlu1 %1343  ;;  %v1212_v4 = vpop.permute.xlu2 %1211 }
 0x2c5   : > { %v1312_v57 = vpop.permute.xlu0 %1311  ;;  %v1744_v50 = vsel %vm1721_vm5, %v1711_v24, %v1344_v46  ;;  %v1709_v30 = vsel %vm1688_vm6, %v3502_v43, %v1212_v4 }
 0x2c6   : > { %v1728_v27 = vsel %vm1721_vm5, %v1695_v25, %v1312_v57 }
 0x2c7   : > { %v1761_v2 = vsel %vm1754_vm7, %v1728_v27, %v1440_v35  ;;  %v4230_v35 = vld [vmem:[#allocation61_spill] sm:$0xff] }
 0x2c8   : > { %2247 = vmatpush.xpose.msk.msra.mxu0 %vm1794_vm8, %v1761_v2  ;;  %v1561_v17 = vsel %vm1556_vm1, %v1528_v37, %v4230_v35  ;;  %v209_v35 = vld [vmem:[%s2355_s20] sm:$0xff] }
 0x2c9   : > { %v1594_v15 = vsel %vm1589_vm2, %v1561_v17, %v4231_v56 }
 0x2ca   : > { %v1627_v18 = vsel %vm1622_vm3, %v1594_v15, %v4232_v51  ;;  %v4237_v15 = vld [vmem:[#allocation7_spill] sm:$0xff] }
 0x2cb   : > { %v1660_v42 = vsel %vm1655_vm4, %v1627_v18, %v3359_v63  ;;  %v1524_v51 = vsel %vm1523_vm0, %v209_v35, %v4237_v15 }
 0x2cc   : > { %v1182_v14 = vpop.permute.xlu1 %1181  ;;  %v1436_v16 = vpop.permute.xlu2 %1435 }
 0x2cd   : > { %v1472_v38 = vpop.permute.xlu0 %1471  ;;  %v1694_v62 = vsel %vm1688_vm6, %v1661_v60, %v1182_v14  ;;  %v4234_v60 = vld [vmem:[#allocation55_spill] sm:$0xff] }
 0x2ce   : > { %v1777_v21 = vsel %vm1754_vm7, %v1744_v50, %v1472_v38 }
 0x2cf   : > { %2264 = vmatpush.xpose.msk.msra.mxu1 %vm1794_vm8, %v1777_v21 }
 0x2d4   : > { %v1342_v54 = vpop.permute.xlu1 %1341  ;;  %v1210_v26 = vpop.permute.xlu2 %1209 }
 0x2d5   : > { %v1310_v33 = vpop.permute.xlu0 %1309  ;;  %v1743_v59 = vsel %vm1721_vm5, %v1710_v5, %v1342_v54  ;;  %v1708_v43 = vsel %vm1688_vm6, %v3505_v32, %v1210_v26  ;;  %v2315_v5 = vmov 0  }
 0x2d6   : > { %v1727_v7 = vsel %vm1721_vm5, %v1694_v62, %v1310_v33  ;;  %v4235_v62 = vld [vmem:[#allocation87_spill] sm:$0xff]  ;;  %2293 = vset.pattern.permute.xlu1 %v2315_v5  ;;  %2294 = vset.pattern.permute.xlu0 %v2315_v5 }
 0x2d7   : > { %v1760_v12 = vsel %vm1754_vm7, %v1727_v7, %v1438_v44  ;;  %v4236_v7 = vld [vmem:[#allocation103_spill] sm:$0xff] }
 0x2d8   : > { %2248 = vmatpush.xpose.msk.msra.mxu0 %vm1794_vm8, %v1760_v12 }
 0x2dc   : > { %v1180_v58 = vpop.permute.xlu1 %1179  ;;  %v1434_v23 = vpop.permute.xlu2 %1433 }
 0x2dd   : > { %v1470_v36 = vpop.permute.xlu0 %1469  ;;  %v1693_v20 = vsel %vm1688_vm6, %v1660_v42, %v1180_v58  ;;  %v4238_v42 = vld [vmem:[#allocation33_spill] sm:$0xff] }
 0x2de   : > { %v1776_v34 = vsel %vm1754_vm7, %v1743_v59, %v1470_v36 }
 0x2df   : > { %2265 = vmatpush.xpose.msk.msra.mxu1 %vm1794_vm8, %v1776_v34 }
 0x2e4   : > { %v1340_v8 = vpop.permute.xlu1 %1339  ;;  %v1208_v29 = vpop.permute.xlu2 %1207 }
 0x2e5   : > { %v1308_v53 = vpop.permute.xlu0 %1307  ;;  %v1742_v39 = vsel %vm1721_vm5, %v1709_v30, %v1340_v8  ;;  %v1707_v61 = vsel %vm1688_vm6, %v3388_v1, %v1208_v29  ;;  %v1788_v1 = vld [vmem:[%s3987_s2] sm:$0xff]  ;;  %v1557_v8 = vsel %vm1556_vm1, %v1524_v51, %v4238_v42 }
 0x2e6   : > { %v1726_v13 = vsel %vm1721_vm5, %v1693_v20, %v1308_v53  ;;  %1791 = vperm.xlu1 %2293, %v1788_v1   ;;  %v4239_v20 = vld [vmem:[#allocation90_spill] sm:$0xff] }
 0x2e7   : > { %v1759_v52 = vsel %vm1754_vm7, %v1726_v13, %v1436_v16  ;;  %v1590_v53 = vsel %vm1589_vm2, %v1557_v8, %v4239_v20  ;;  %v1787_v29 = vld [vmem:[%s3986_s1] sm:$0xff] }
 0x2e8   : > { %2249 = vmatpush.xpose.msk.msra.mxu0 %vm1794_vm8, %v1759_v52  ;;  %v4241_v52 = vld [vmem:[#allocation20_spill] sm:$0xff] }
 0x2ec   : > { %v1178_v11 = vpop.permute.xlu1 %1177  ;;  %v1432_v14 = vpop.permute.xlu2 %1431 }
 0x2ed   : > { %v1468_v40 = vpop.permute.xlu0 %1467  ;;  %v1692_v46 = vsel %vm1688_vm6, %v3249_v31, %v1178_v11 }
 0x2ee   : > { %v1775_v63 = vsel %vm1754_vm7, %v1742_v39, %v1468_v40 }
 0x2ef   : > { %2266 = vmatpush.xpose.msk.msra.mxu1 %vm1794_vm8, %v1775_v63 }
 0x2f4   : > { %v1338_v44 = vpop.permute.xlu1 %1337  ;;  %v1206_v32 = vpop.permute.xlu2 %1205 }
 0x2f5   : > { %v1306_v25 = vpop.permute.xlu0 %1305  ;;  %v1741_v24 = vsel %vm1721_vm5, %v1708_v43, %v1338_v44  ;;  %v1706_v37 = vsel %vm1688_vm6, %v3470_v6, %v1206_v32  ;;  %v4240_v6 = vld [vmem:[#allocation104_spill] sm:$0xff] }
 0x2f6   : > { %v1725_v57 = vsel %vm1721_vm5, %v1692_v46, %v1306_v25  ;;  %v1623_v13 = vsel %vm1622_vm3, %v1590_v53, %v4240_v6 }
 0x2f7   : > { %v1758_v27 = vsel %vm1754_vm7, %v1725_v57, %v1434_v23  ;;  %v1656_v23 = vsel %vm1655_vm4, %v1623_v13, %v4241_v52 }
 0x2f8   : > { %2250 = vmatpush.xpose.msk.msra.mxu0 %vm1794_vm8, %v1758_v27 }
 0x2fc   : > { %v1176_v2 = vpop.permute.xlu1 %1175  ;;  %v1430_v16 = vpop.permute.xlu2 %1429 }
 0x2fd   : > { %v1466_v4 = vpop.permute.xlu0 %1465  ;;  %v1691_v38 = vsel %vm1688_vm6, %v3345_v48, %v1176_v2  ;;  %v4233_v48 = vld [vmem:[#allocation10_spill] sm:$0xff] }
 0x2fe   : > { %v1774_v50 = vsel %vm1754_vm7, %v1741_v24, %v1466_v4  ;;  %v1525_v28 = vsel %vm1523_vm0, %v210_v47, %v4233_v48 }
 0x2ff   : > { %2267 = vmatpush.xpose.msk.msra.mxu1 %vm1794_vm8, %v1774_v50  ;;  %v1558_v54 = vsel %vm1556_vm1, %v1525_v28, %v4234_v60 }
 0x300   : > { %v1591_v33 = vsel %vm1589_vm2, %v1558_v54, %v4235_v62 }
 0x301   : > { %v1624_v12 = vsel %vm1622_vm3, %v1591_v33, %v4236_v7 }
 0x302   : > { %v1657_v58 = vsel %vm1655_vm4, %v1624_v12, %v3347_v9 }
 0x304   : > { %v1336_v31 = vpop.permute.xlu1 %1335  ;;  %v1204_v26 = vpop.permute.xlu2 %1203 }
 0x305   : > { %v1304_v21 = vpop.permute.xlu0 %1303  ;;  %v1740_v55 = vsel %vm1721_vm5, %v1707_v61, %v1336_v31  ;;  %v1705_v46 = vsel %vm1688_vm6, %v3473_v45, %v1204_v26 }
 0x306   : > { %v1724_v3 = vsel %vm1721_vm5, %v1691_v38, %v1304_v21 }
 0x307   : > { %v1757_v10 = vsel %vm1754_vm7, %v1724_v3, %v1432_v14 }
 0x308   : > { %2251 = vmatpush.xpose.msk.msra.mxu0 %vm1794_vm8, %v1757_v10 }
 0x30c   : > { %v1174_v19 = vpop.permute.xlu1 %1173  ;;  %v1428_v30 = vpop.permute.xlu2 %1427 }
 0x30d   : > { %v1464_v41 = vpop.permute.xlu0 %1463  ;;  %v1690_v59 = vsel %vm1688_vm6, %v1657_v58, %v1174_v19 }
 0x30e   : > { %v1773_v49 = vsel %vm1754_vm7, %v1740_v55, %v1464_v41 }
 0x30f   : > { %2268 = vmatpush.xpose.msk.msra.mxu1 %vm1794_vm8, %v1773_v49 }
 0x314   : > { %v1334_v34 = vpop.permute.xlu1 %1333 }
 0x315   : > { %v1302_v36 = vpop.permute.xlu0 %1301  ;;  %v1739_v17 = vsel %vm1721_vm5, %v1706_v37, %v1334_v34 }
 0x316   : > { %v1723_v22 = vsel %vm1721_vm5, %v1690_v59, %v1302_v36 }
 0x317   : > { %v1756_v0 = vsel %vm1754_vm7, %v1723_v22, %v1430_v16 }
 0x318   : > { %2252 = vmatpush.xpose.msk.msra.mxu0 %vm1794_vm8, %v1756_v0 }
 0x31c   : > { %v1172_v18 = vpop.permute.xlu1 %1171 }
 0x31d   : > { %v1462_v56 = vpop.permute.xlu0 %1461  ;;  %v1689_v11 = vsel %vm1688_vm6, %v1656_v23, %v1172_v18 }
 0x31e   : > { %v1772_v9 = vsel %vm1754_vm7, %v1739_v17, %v1462_v56 }
 0x31f   : > { %2269 = vmatpush.xpose.msk.msra.mxu1 %vm1794_vm8, %v1772_v9 }
 0x324   : > { %v1332_v44 = vpop.permute.xlu1 %1331 }
 0x325   : > { %v1300_v39 = vpop.permute.xlu0 %1299  ;;  %v1738_v25 = vsel %vm1721_vm5, %v1705_v46, %v1332_v44 }
 0x326   : > { %v1722_v40 = vsel %vm1721_vm5, %v1689_v11, %v1300_v39 }
 0x327   : > { %v1755_v63 = vsel %vm1754_vm7, %v1722_v40, %v1428_v30 }
 0x328   : > { %2253 = vmatpush.xpose.msk.msra.mxu0 %vm1794_vm8, %v1755_v63 }
 0x32b   : > { %2254 = vmatmul.msk.f32.vlgmr.msra.gmra.mxu0 %vm1794_vm8, %v1787_v29 }
 0x32d   : > { %v1460_v57 = vpop.permute.xlu0 %1459 }
 0x32e   : > { %v1771_v27 = vsel %vm1754_vm7, %v1738_v25, %v1460_v57 }
 0x32f   : > { %2270 = vmatpush.xpose.msk.msra.mxu1 %vm1794_vm8, %v1771_v27 }
 0x332   : > { %2271 = vmatmul.msk.f32.vlgmr.msra.gmra.mxu1 %vm1794_vm8, %v1787_v29 }
 0x358   : > { %v1792_v43 = vpop.permute.xlu1 %1791 }
 0x3a8   : > { %v1911_v2 = vpop.f32.mrf.mxu0 }
 0x3a9   : > { %v1912_v24 = vadd.f32 %v1911_v2, %v1792_v43 }
 0x3ab   : > { %1934 = vst [vmem:[%s204_s10] sm:$0xff] %v1912_v24 }
 0x3af   : > { %v1931_v45 = vpop.f32.mrf.mxu1 }
 0x3b0   : > { %v1932_v4 = vadd.f32 %v1931_v45, %v1792_v43 }
 0x3b2   : > { %1935 = vst [vmem:[%s204_s10 + $0x8] sm:$0xff] %v1932_v4  ;;  %v1936_v14 = vadd.f32 %v1932_v4, %v1912_v24 }
 0x3b4   : > { %1937 = vadd.xlane.f32.xlu2 %v1936_v14 }
 0x427   : > { %v1938_v50 = vpop.xlane.xlu2 %1937 }
 0x428   : > { %v1939_v31 = vmul.f32 0.00390625, %v1938_v50 }
 0x42a   : > { %v1940_v38 = vsub.f32 %v1912_v24, %v1939_v31  ;;  %v1941_v21 = vsub.f32 %v1932_v4, %v1939_v31 }
 0x42c   : > { %v1942_v3 = vmul.f32 %v1940_v38, %v1940_v38  ;;  %v1943_v10 = vmul.f32 %v1941_v21, %v1941_v21 }
 0x42e   : > { %v1944_v32 = vadd.f32 %v1943_v10, %v1942_v3 }
 0x430   : > { %1945 = vadd.xlane.f32.xlu0 %v1944_v32 }
 0x4a3   : > { %v1946_v61 = vpop.xlane.xlu0 %1945 }
 0x4a4   : > { %v1948_v19 = vsel %vm1947_vm9, %v1938_v50, %v1946_v61 }
 0x4a5   : > { %1950 = vst.msk [vmem:[%s208_s14] sm:$0xff] %vm1949_vm10, %v1948_v19 }
 0x4a6 PF: > { %s15_s15 = sadd.s32 1, %s2305_s15  }
 0x4a7   : > { %p12_p4 = scmp.ge.s32.totalorder %s15_s15, 4  }
 0x4a9   :  { %14 = sbr.rel (!%p12_p4) target bundleno = 1 (0x1), region = 76 }

</bundles_post_ra>
